<compile_context>
chip_gen: v6e
topology: v6e:2x2x1
jax: 0.10.0
libtpu: 0.0.40
codegen_flags: <defaults>
</compile_context>

<pallas_src>
import functools

import jax
import jax.numpy as jnp
import numpy as np
from jax.experimental import pallas as pl
from jax.experimental.pallas import tpu as pltpu


def _round_up(x, m):
    return (x + m - 1) // m * m


# ----------------------------- Pallas kernels ------------------------------

def conv_pool_act_kernel(cols_ref, w_ref, b_ref, o_ref, *, activation):
    """Fused Conv2d(3x3, pad=1) [im2col matmul] + bias + MaxPool2d(2,2) + activation.

    cols_ref: (4, TM, K) bf16 -- leading axis = the 4 positions of the 2x2 pooling
                                 window, TM = pooled output pixels for this tile.
    w_ref:    (K, Cout)  bf16
    b_ref:    (1, Cout)  f32
    o_ref:    (TM, Cout) bf16
    """
    tm = o_ref.shape[0]
    k = w_ref.shape[0]
    # Single long MXU stream over all 4 pool phases (the collapse is tile-aligned
    # because TM % 8 == 0), f32 accumulation.
    y = jnp.dot(cols_ref[...].reshape(4 * tm, k), w_ref[...],
                preferred_element_type=jnp.float32)                  # (4*TM, Cout)
    # 2x2 max-pool across the 4 phase slabs; bias is a per-channel constant and max
    # is monotone, so pooling before the bias add is equivalent.
    acc = jnp.maximum(jnp.maximum(y[0 * tm:1 * tm], y[1 * tm:2 * tm]),
                      jnp.maximum(y[2 * tm:3 * tm], y[3 * tm:4 * tm]))
    acc = acc + b_ref[...]
    if activation == "relu":
        acc = jnp.maximum(acc, 0.0)
    else:  # sigmoid: exp and the approximate reciprocal both ride the EUP slot
        acc = pl.reciprocal(1.0 + jnp.exp(-acc), approx=True)
    o_ref[...] = acc.astype(o_ref.dtype)


def fc_kernel(x_ref, w_ref, b_ref, o_ref):
    """Linear layer: (TN, K) @ (K, 128) + bias, lane-dense (padded) output."""
    o_ref[...] = (jnp.dot(x_ref[...], w_ref[...],
                          preferred_element_type=jnp.float32)
                  + b_ref[...]).astype(o_ref.dtype)


# ------------------------------ Pallas wrappers ----------------------------

def conv_pool_act(cols, w2d, b, activation, *, tm_target=512):
    """cols: (4, M, K) bf16;  w2d: (K, Cout) bf16;  b: (1, Cout) f32  ->  (M, Cout) bf16."""
    _, m, k = cols.shape
    cout = w2d.shape[1]
    tm = min(tm_target, _round_up(m, 8))           # M tile, multiple of 8 sublanes
    m_pad = _round_up(m, tm)
    if m_pad != m:
        cols = jnp.pad(cols, ((0, 0), (0, m_pad - m), (0, 0)))
    kernel = functools.partial(conv_pool_act_kernel, activation=activation)
    out = pl.pallas_call(
        kernel,
        out_shape=jax.ShapeDtypeStruct((m_pad, cout), jnp.bfloat16),
        grid_spec=pltpu.PrefetchScalarGridSpec(
            num_scalar_prefetch=0,
            grid=(m_pad // tm,),
            in_specs=[
                pl.BlockSpec((4, tm, k), lambda i: (0, i, 0)),
                pl.BlockSpec((k, cout), lambda i: (0, 0)),
                pl.BlockSpec((1, cout), lambda i: (0, 0)),
            ],
            out_specs=pl.BlockSpec((tm, cout), lambda i: (i, 0)),
        ),
        compiler_params=pltpu.CompilerParams(dimension_semantics=("parallel",)),
    )(cols, w2d, b)
    return out[:m] if m_pad != m else out


def fc(x, w_pad, b_pad, n_out, *, tn_target=256):
    """x: (N, K) bf16; w_pad: (K, 128) bf16; b_pad: (1, 128) f32 -> (N, n_out) f32."""
    n, k = x.shape
    cout_pad = w_pad.shape[1]
    tn = min(tn_target, _round_up(n, 8))
    n_pad = _round_up(n, tn)
    if n_pad != n:
        x = jnp.pad(x, ((0, n_pad - n), (0, 0)))
    out = pl.pallas_call(
        fc_kernel,
        out_shape=jax.ShapeDtypeStruct((n_pad, cout_pad), jnp.float32),
        grid_spec=pltpu.PrefetchScalarGridSpec(
            num_scalar_prefetch=0,
            grid=(n_pad // tn,),
            in_specs=[
                pl.BlockSpec((tn, k), lambda i: (i, 0)),
                pl.BlockSpec((k, cout_pad), lambda i: (0, 0)),
                pl.BlockSpec((1, cout_pad), lambda i: (0, 0)),
            ],
            out_specs=pl.BlockSpec((tn, cout_pad), lambda i: (i, 0)),
        ),
        compiler_params=pltpu.CompilerParams(dimension_semantics=("parallel",)),
    )(x, w_pad, b_pad)
    return out[:n, :n_out]


# ----------------------------- plain-JAX glue -------------------------------

def im2col_pooled(x_pad, ho, wo, ksize=3):
    """Build (4, N*ho*wo, ksize*ksize*Cin) patches for a stride-1 conv followed by a
    2x2/stride-2 max-pool.  Leading axis enumerates the 4 pooling-window phases."""
    n, _, _, cin = x_pad.shape
    phases = []
    for ph in range(2):
        for pw in range(2):
            taps = []
            for dy in range(ksize):
                for dx in range(ksize):
                    r0 = ph + dy
                    c0 = pw + dx
                    sl = x_pad[:, r0:r0 + 2 * (ho - 1) + 1:2,
                               c0:c0 + 2 * (wo - 1) + 1:2, :]   # (N, ho, wo, Cin)
                    taps.append(sl)
            pt = jnp.stack(taps, axis=3)                         # (N, ho, wo, 9, Cin)
            phases.append(pt.reshape(n * ho * wo, ksize * ksize * cin))
    return jnp.stack(phases, axis=0)                             # (4, M, 9*Cin)


def net_forward(x_nchw, target, p):
    """Equivalent of Net.forward(x, target): target is accepted but unused."""
    del target  # Net.forward never uses it
    n = x_nchw.shape[0]
    x = jnp.transpose(x_nchw, (0, 2, 3, 1)).astype(jnp.bfloat16)      # NHWC, bf16 MXU feed

    # _conv1: Conv2d(1,16,3,pad=1) -> MaxPool2d(2,2) -> ReLU
    xp = jnp.pad(x, ((0, 0), (1, 1), (1, 1), (0, 0)))
    cols1 = im2col_pooled(xp, 14, 14)                                 # (4, N*196, 9)
    h1 = conv_pool_act(cols1, p["w1"], p["b1"], "relu")               # (N*196, 16) bf16
    h1 = h1.reshape(n, 14, 14, 16)

    # _conv2: Conv2d(16,32,3,pad=1) -> MaxPool2d(2,2) -> Sigmoid
    h1p = jnp.pad(h1, ((0, 0), (1, 1), (1, 1), (0, 0)))
    cols2 = im2col_pooled(h1p, 7, 7)                                  # (4, N*49, 144)
    h2 = conv_pool_act(cols2, p["w2"], p["b2"], "sigmoid")            # (N*49, 32) bf16

    # fc: Linear(32*7*7, 10).  The NCHW flatten permutation of x.view(-1, 32*7*7) is
    # folded into p["wfc"], so the NHWC-flattened h2 is consumed directly (no transpose).
    flat = h2.reshape(n, 7 * 7 * 32)
    return fc(flat, p["wfc"], p["bfc"], 10)                           # (N, 10) f32


# --------------------------- parameter preparation ---------------------------

def prepare_params(params):
    """Reshape/cast params for the kernels: bf16 MXU feeds, NCHW-flatten permutation
    folded into the FC weight, FC output columns zero-padded to 128 (lane-dense)."""
    wfc = params["wfc"]                                   # (32*7*7, 10), rows in (c,h,w) order
    w_nhwc = wfc.reshape(32, 7, 7, 10).transpose(1, 2, 0, 3).reshape(7 * 7 * 32, 10)
    wfc_pad = jnp.zeros((7 * 7 * 32, 128), jnp.bfloat16).at[:, :10].set(
        w_nhwc.astype(jnp.bfloat16))
    bfc_pad = jnp.zeros((1, 128), jnp.float32).at[:, :10].set(params["bfc"])
    return {
        "w1": params["w1"].reshape(9 * 1, 16).astype(jnp.bfloat16),
        "b1": params["b1"].astype(jnp.float32),
        "w2": params["w2"].reshape(9 * 16, 32).astype(jnp.bfloat16),
        "b2": params["b2"].astype(jnp.float32),
        "wfc": wfc_pad,
        "bfc": bfc_pad,
    }


# ------------------------------ reference (XLA) ------------------------------

def _ref_conv_block(x, w, b, activation):
    y = jax.lax.conv_general_dilated(
        x, w, window_strides=(1, 1), padding="SAME",
        dimension_numbers=("NHWC", "HWIO", "NHWC"),
        precision=jax.lax.Precision.HIGHEST)
    y = y + b.reshape(1, 1, 1, -1)
    y = jax.lax.reduce_window(y, -jnp.inf, jax.lax.max,
                              (1, 2, 2, 1), (1, 2, 2, 1), "VALID")
    if activation == "relu":
        return jnp.maximum(y, 0.0)
    return 1.0 / (1.0 + jnp.exp(-y))


def reference_forward(x_nchw, params):
    n = x_nchw.shape[0]
    x = jnp.transpose(x_nchw, (0, 2, 3, 1)).astype(jnp.float32)
    h1 = _ref_conv_block(x, params["w1"], params["b1"], "relu")
    h2 = _ref_conv_block(h1, params["w2"], params["b2"], "sigmoid")
    flat = jnp.transpose(h2, (0, 3, 1, 2)).reshape(n, 32 * 7 * 7)     # NCHW flatten
    return jnp.dot(flat, params["wfc"],
                   precision=jax.lax.Precision.HIGHEST) + params["bfc"]


# ------------------------------ params / main --------------------------------

def init_params(key):
    k1, k2, k3, k4, k5, k6 = jax.random.split(key, 6)

    def unif(k, shape, fan_in):
        bound = 1.0 / np.sqrt(fan_in)
        return jax.random.uniform(k, shape, jnp.float32, -bound, bound)

    return {
        "w1": unif(k1, (3, 3, 1, 16), 9),           # HWIO
        "b1": unif(k2, (1, 16), 9),
        "w2": unif(k3, (3, 3, 16, 32), 9 * 16),     # HWIO
        "b2": unif(k4, (1, 32), 9 * 16),
        "wfc": unif(k5, (32 * 7 * 7, 10), 32 * 7 * 7),
        "bfc": unif(k6, (1, 10), 32 * 7 * 7),
    }


if __name__ == "__main__":
    key = jax.random.PRNGKey(0)
    kx, kt = jax.random.split(key)
    x = jax.random.normal(kx, (2, 1, 28, 28), dtype=jnp.float32)  # MNIST-shaped input
    target = jax.random.randint(kt, (2,), 0, 10)                   # unused by forward

    params = init_params(jax.random.PRNGKey(42))
    prepped = prepare_params(params)

    logits = jax.jit(net_forward)(x, target, prepped)
    logits = jax.block_until_ready(logits)
    assert logits.shape == (2, 10), logits.shape

    ref = reference_forward(x, params)
    err = float(jnp.max(jnp.abs(logits - ref)))
    # bf16 MXU feeds + approx reciprocal in the sigmoid -> compare loosely vs f32/HIGHEST ref
    assert err < 3e-2, f"mismatch vs reference: max abs err = {err}"

    print("KERNEL_OK")
</pallas_src>

<mosaic_0001>
module attributes {stable_mosaic.version = 11 : i64} {
  func.func @conv_pool_act_kernel(%arg0: i32, %arg1: memref<4x392x9xbf16, #tpu.memory_space<vmem>>, %arg2: memref<9x16xbf16, #tpu.memory_space<vmem>>, %arg3: memref<1x16xf32, #tpu.memory_space<vmem>>, %arg4: memref<392x16xbf16, #tpu.memory_space<vmem>>) attributes {dimension_semantics = [#tpu.dimension_semantics<parallel>], iteration_bounds = array<i64: 1>, scalar_prefetch = 0 : i64, scratch_operands = 0 : i64, tpu.core_type = #tpu.core_type<tc>, window_params = [{transform_indices = @transform_0, window_bounds = array<i64: 4, 392, 9>}, {pipeline_mode = #tpu.pipeline_mode<synchronous>, transform_indices = @transform_1, window_bounds = array<i64: 9, 16>}, {pipeline_mode = #tpu.pipeline_mode<synchronous>, transform_indices = @transform_2, window_bounds = array<i64: 1, 16>}, {transform_indices = @transform_3, window_bounds = array<i64: 392, 16>}]} {
    %c0 = arith.constant 0 : index
    %c0_0 = arith.constant 0 : index
    %c0_1 = arith.constant 0 : index
    %0 = vector.load %arg1[%c0, %c0_0, %c0_1] : memref<4x392x9xbf16, #tpu.memory_space<vmem>>, vector<4x392x9xbf16>
    %1 = vector.shape_cast %0 : vector<4x392x9xbf16> to vector<1568x9xbf16>
    %c0_2 = arith.constant 0 : index
    %c0_3 = arith.constant 0 : index
    %2 = vector.load %arg2[%c0_2, %c0_3] : memref<9x16xbf16, #tpu.memory_space<vmem>>, vector<9x16xbf16>
    %cst = arith.constant dense<0.000000e+00> : vector<1568x16xf32>
    %3 = tpu.matmul %1, %2, %cst {dimension_numbers = #tpu.dot_dimension_numbers<[1], [0], [0], [1], [0, 0, 1, 1], [], []>} : vector<1568x9xbf16>, vector<9x16xbf16>, vector<1568x16xf32> -> vector<1568x16xf32>
    %4 = vector.extract_strided_slice %3 {offsets = [0, 0], sizes = [392, 16], strides = [1, 1]} : vector<1568x16xf32> to vector<392x16xf32>
    %5 = vector.extract_strided_slice %3 {offsets = [392, 0], sizes = [392, 16], strides = [1, 1]} : vector<1568x16xf32> to vector<392x16xf32>
    %6 = arith.maximumf %4, %5 : vector<392x16xf32>
    %7 = vector.extract_strided_slice %3 {offsets = [784, 0], sizes = [392, 16], strides = [1, 1]} : vector<1568x16xf32> to vector<392x16xf32>
    %8 = vector.extract_strided_slice %3 {offsets = [1176, 0], sizes = [392, 16], strides = [1, 1]} : vector<1568x16xf32> to vector<392x16xf32>
    %9 = arith.maximumf %7, %8 : vector<392x16xf32>
    %10 = arith.maximumf %6, %9 : vector<392x16xf32>
    %c0_4 = arith.constant 0 : index
    %c0_5 = arith.constant 0 : index
    %11 = vector.load %arg3[%c0_4, %c0_5] : memref<1x16xf32, #tpu.memory_space<vmem>>, vector<1x16xf32>
    %12 = vector.broadcast %11 : vector<1x16xf32> to vector<392x16xf32>
    %13 = arith.addf %10, %12 : vector<392x16xf32>
    %cst_6 = arith.constant 0.000000e+00 : f32
    %14 = vector.broadcast %cst_6 : f32 to vector<392x16xf32>
    %15 = arith.maximumf %13, %14 : vector<392x16xf32>
    %16 = arith.truncf %15 : vector<392x16xf32> to vector<392x16xbf16>
    %c0_7 = arith.constant 0 : index
    %c0_8 = arith.constant 0 : index
    %17 = vector.load %arg4[%c0_7, %c0_8] : memref<392x16xbf16, #tpu.memory_space<vmem>>, vector<392x16xbf16>
    tpu.vector_store %arg4[%c0_7, %c0_8], %16 {strides = array<i32>} : memref<392x16xbf16, #tpu.memory_space<vmem>>, vector<392x16xbf16>,
    return
  }
  func.func @transform_0(%arg0: i32) -> (i32, i32, i32) {
    %c0_i32 = arith.constant 0 : i32
    %c0_i32_0 = arith.constant 0 : i32
    %c0_i32_1 = arith.constant 0 : i32
    return %c0_i32, %arg0, %c0_i32_0 : i32, i32, i32
  }
  func.func @transform_1(%arg0: i32) -> (i32, i32) {
    %c0_i32 = arith.constant 0 : i32
    %c0_i32_0 = arith.constant 0 : i32
    %c0_i32_1 = arith.constant 0 : i32
    return %c0_i32, %c0_i32_0 : i32, i32
  }
  func.func @transform_2(%arg0: i32) -> (i32, i32) {
    %c0_i32 = arith.constant 0 : i32
    %c0_i32_0 = arith.constant 0 : i32
    %c0_i32_1 = arith.constant 0 : i32
    return %c0_i32, %c0_i32_0 : i32, i32
  }
  func.func @transform_3(%arg0: i32) -> (i32, i32) {
    %c0_i32 = arith.constant 0 : i32
    %c0_i32_0 = arith.constant 0 : i32
    return %arg0, %c0_i32 : i32, i32
  }
}

module attributes {stable_mosaic.version = 11 : i64} {
  func.func @conv_pool_act_kernel(%arg0: i32, %arg1: memref<4x104x144xbf16, #tpu.memory_space<vmem>>, %arg2: memref<144x32xbf16, #tpu.memory_space<vmem>>, %arg3: memref<1x32xf32, #tpu.memory_space<vmem>>, %arg4: memref<104x32xbf16, #tpu.memory_space<vmem>>) attributes {dimension_semantics = [#tpu.dimension_semantics<parallel>], iteration_bounds = array<i64: 1>, scalar_prefetch = 0 : i64, scratch_operands = 0 : i64, tpu.core_type = #tpu.core_type<tc>, window_params = [{transform_indices = @transform_0, window_bounds = array<i64: 4, 104, 144>}, {pipeline_mode = #tpu.pipeline_mode<synchronous>, transform_indices = @transform_1, window_bounds = array<i64: 144, 32>}, {pipeline_mode = #tpu.pipeline_mode<synchronous>, transform_indices = @transform_2, window_bounds = array<i64: 1, 32>}, {transform_indices = @transform_3, window_bounds = array<i64: 104, 32>}]} {
    %c0 = arith.constant 0 : index
    %c0_0 = arith.constant 0 : index
    %c0_1 = arith.constant 0 : index
    %0 = vector.load %arg1[%c0, %c0_0, %c0_1] : memref<4x104x144xbf16, #tpu.memory_space<vmem>>, vector<4x104x144xbf16>
    %1 = vector.shape_cast %0 : vector<4x104x144xbf16> to vector<416x144xbf16>
    %c0_2 = arith.constant 0 : index
    %c0_3 = arith.constant 0 : index
    %2 = vector.load %arg2[%c0_2, %c0_3] : memref<144x32xbf16, #tpu.memory_space<vmem>>, vector<144x32xbf16>
    %cst = arith.constant dense<0.000000e+00> : vector<416x32xf32>
    %3 = tpu.matmul %1, %2, %cst {dimension_numbers = #tpu.dot_dimension_numbers<[1], [0], [0], [1], [0, 0, 1, 1], [], []>} : vector<416x144xbf16>, vector<144x32xbf16>, vector<416x32xf32> -> vector<416x32xf32>
    %4 = vector.extract_strided_slice %3 {offsets = [0, 0], sizes = [104, 32], strides = [1, 1]} : vector<416x32xf32> to vector<104x32xf32>
    %5 = vector.extract_strided_slice %3 {offsets = [104, 0], sizes = [104, 32], strides = [1, 1]} : vector<416x32xf32> to vector<104x32xf32>
    %6 = arith.maximumf %4, %5 : vector<104x32xf32>
    %7 = vector.extract_strided_slice %3 {offsets = [208, 0], sizes = [104, 32], strides = [1, 1]} : vector<416x32xf32> to vector<104x32xf32>
    %8 = vector.extract_strided_slice %3 {offsets = [312, 0], sizes = [104, 32], strides = [1, 1]} : vector<416x32xf32> to vector<104x32xf32>
    %9 = arith.maximumf %7, %8 : vector<104x32xf32>
    %10 = arith.maximumf %6, %9 : vector<104x32xf32>
    %c0_4 = arith.constant 0 : index
    %c0_5 = arith.constant 0 : index
    %11 = vector.load %arg3[%c0_4, %c0_5] : memref<1x32xf32, #tpu.memory_space<vmem>>, vector<1x32xf32>
    %12 = vector.broadcast %11 : vector<1x32xf32> to vector<104x32xf32>
    %13 = arith.addf %10, %12 : vector<104x32xf32>
    %cst_6 = arith.constant 0.000000e+00 : f32
    %14 = vector.broadcast %cst_6 : f32 to vector<104x32xf32>
    %15 = arith.subf %14, %13 : vector<104x32xf32>
    %16 = math.exp %15 : vector<104x32xf32>
    %cst_7 = arith.constant 1.000000e+00 : f32
    %17 = vector.broadcast %cst_7 : f32 to vector<104x32xf32>
    %18 = arith.addf %17, %16 : vector<104x32xf32>
    %19 = tpu.reciprocal %18 {approx = true} : vector<104x32xf32> -> vector<104x32xf32>
    %20 = arith.truncf %19 : vector<104x32xf32> to vector<104x32xbf16>
    %c0_8 = arith.constant 0 : index
    %c0_9 = arith.constant 0 : index
    %21 = vector.load %arg4[%c0_8, %c0_9] : memref<104x32xbf16, #tpu.memory_space<vmem>>, vector<104x32xbf16>
    tpu.vector_store %arg4[%c0_8, %c0_9], %20 {strides = array<i32>} : memref<104x32xbf16, #tpu.memory_space<vmem>>, vector<104x32xbf16>,
    return
  }
  func.func @transform_0(%arg0: i32) -> (i32, i32, i32) {
    %c0_i32 = arith.constant 0 : i32
    %c0_i32_0 = arith.constant 0 : i32
    %c0_i32_1 = arith.constant 0 : i32
    return %c0_i32, %arg0, %c0_i32_0 : i32, i32, i32
  }
  func.func @transform_1(%arg0: i32) -> (i32, i32) {
    %c0_i32 = arith.constant 0 : i32
    %c0_i32_0 = arith.constant 0 : i32
    %c0_i32_1 = arith.constant 0 : i32
    return %c0_i32, %c0_i32_0 : i32, i32
  }
  func.func @transform_2(%arg0: i32) -> (i32, i32) {
    %c0_i32 = arith.constant 0 : i32
    %c0_i32_0 = arith.constant 0 : i32
    %c0_i32_1 = arith.constant 0 : i32
    return %c0_i32, %c0_i32_0 : i32, i32
  }
  func.func @transform_3(%arg0: i32) -> (i32, i32) {
    %c0_i32 = arith.constant 0 : i32
    %c0_i32_0 = arith.constant 0 : i32
    return %arg0, %c0_i32 : i32, i32
  }
}

module attributes {stable_mosaic.version = 11 : i64} {
  func.func @fc_kernel(%arg0: i32, %arg1: memref<8x1568xbf16, #tpu.memory_space<vmem>>, %arg2: memref<1568x128xbf16, #tpu.memory_space<vmem>>, %arg3: memref<1x128xf32, #tpu.memory_space<vmem>>, %arg4: memref<8x128xf32, #tpu.memory_space<vmem>>) attributes {dimension_semantics = [#tpu.dimension_semantics<parallel>], iteration_bounds = array<i64: 1>, scalar_prefetch = 0 : i64, scratch_operands = 0 : i64, tpu.core_type = #tpu.core_type<tc>, window_params = [{transform_indices = @transform_0, window_bounds = array<i64: 8, 1568>}, {pipeline_mode = #tpu.pipeline_mode<synchronous>, transform_indices = @transform_1, window_bounds = array<i64: 1568, 128>}, {pipeline_mode = #tpu.pipeline_mode<synchronous>, transform_indices = @transform_2, window_bounds = array<i64: 1, 128>}, {transform_indices = @transform_3, window_bounds = array<i64: 8, 128>}]} {
    %c0 = arith.constant 0 : index
    %c0_0 = arith.constant 0 : index
    %0 = vector.load %arg1[%c0, %c0_0] : memref<8x1568xbf16, #tpu.memory_space<vmem>>, vector<8x1568xbf16>
    %c0_1 = arith.constant 0 : index
    %c0_2 = arith.constant 0 : index
    %1 = vector.load %arg2[%c0_1, %c0_2] : memref<1568x128xbf16, #tpu.memory_space<vmem>>, vector<1568x128xbf16>
    %cst = arith.constant dense<0.000000e+00> : vector<8x128xf32>
    %2 = tpu.matmul %0, %1, %cst {dimension_numbers = #tpu.dot_dimension_numbers<[1], [0], [0], [1], [0, 0, 1, 1], [], []>} : vector<8x1568xbf16>, vector<1568x128xbf16>, vector<8x128xf32> -> vector<8x128xf32>
    %c0_3 = arith.constant 0 : index
    %c0_4 = arith.constant 0 : index
    %3 = vector.load %arg3[%c0_3, %c0_4] : memref<1x128xf32, #tpu.memory_space<vmem>>, vector<1x128xf32>
    %4 = vector.broadcast %3 : vector<1x128xf32> to vector<8x128xf32>
    %5 = arith.addf %2, %4 : vector<8x128xf32>
    %c0_5 = arith.constant 0 : index
    %c0_6 = arith.constant 0 : index
    %6 = vector.load %arg4[%c0_5, %c0_6] : memref<8x128xf32, #tpu.memory_space<vmem>>, vector<8x128xf32>
    tpu.vector_store %arg4[%c0_5, %c0_6], %5 {strides = array<i32>} : memref<8x128xf32, #tpu.memory_space<vmem>>, vector<8x128xf32>,
    return
  }
  func.func @transform_0(%arg0: i32) -> (i32, i32) {
    %c0_i32 = arith.constant 0 : i32
    %c0_i32_0 = arith.constant 0 : i32
    return %arg0, %c0_i32 : i32, i32
  }
  func.func @transform_1(%arg0: i32) -> (i32, i32) {
    %c0_i32 = arith.constant 0 : i32
    %c0_i32_0 = arith.constant 0 : i32
    %c0_i32_1 = arith.constant 0 : i32
    return %c0_i32, %c0_i32_0 : i32, i32
  }
  func.func @transform_2(%arg0: i32) -> (i32, i32) {
    %c0_i32 = arith.constant 0 : i32
    %c0_i32_0 = arith.constant 0 : i32
    %c0_i32_1 = arith.constant 0 : i32
    return %c0_i32, %c0_i32_0 : i32, i32
  }
  func.func @transform_3(%arg0: i32) -> (i32, i32) {
    %c0_i32 = arith.constant 0 : i32
    %c0_i32_0 = arith.constant 0 : i32
    return %arg0, %c0_i32 : i32, i32
  }
}

</mosaic_0001>

<bundles_post_ra>
// kernel: net_forward.3
= control target key start
LH: loop header
LB: loop body
LE: loop exit
PB: predicated region body
PF: predicated region fallthrough
CT: control target
= control target key end

     0   :  { %vm1003_vm0 = vcmask 1043456   ;;  %vm1004_vm1 = vcmask 1044480   ;;  %vm708_vm2 = vcmask 72704   ;;  %v3025_v1 = vmov 65535   ;;  %s3991_s1 = inlined_call_operand.vmem [shape: bf16[9,16], index: 1, kind: input, shape index: {}]   ;;  %s3992_s0 = inlined_call_operand.vmem [shape: bf16[4,392,9], index: 0, kind: input, shape index: {}]   ;;  %s3993_s2 = inlined_call_operand.vmem [shape: f32[1,16], index: 2, kind: input, shape index: {}]   ;;  %s3994_s3 = inlined_call_operand.vmem [shape: bf16[392,16], index: 3, kind: output, shape index: {}]  }
   0x1   :  { %v2926_v0 = vld [vmem:[%s3991_s1] sm:$0x1f]   ;;  %v1005_v2 = vsel %vm1003_vm0, 4294967295, %v3025_v1  ;;  %v2928_v5 = vld [vmem:[%s3992_s0 + $0x190] sm:$0xff]   ;;  %v2929_v7 = vld [vmem:[%s3992_s0 + $0x8] sm:$0xff]   ;;  %vm2276_vm3 = vcmask 125952  }
   0x2   :  { %v2927_v3 = vld [vmem:[%s3992_s0] sm:$0xff]   ;;  %v1006_v4 = vsel %vm1004_vm1, %v1005_v2, 0  ;;  %2827 = vmatprep.mubr.msk.bf16.mxu1 %vm708_vm2, %v2928_v5  ;;  %v2930_v8 = vld [vmem:[%s3992_s0 + $0x198] sm:$0xff]   ;;  %v2931_v9 = vld [vmem:[%s3992_s0 + $0x10] sm:$0xff]  }
   0x3   :  { %v1008_v6 = vand.u32 %v2926_v0, %v1006_v4  ;;  %2727 = vmatprep.mubr.msk.bf16.mxu0 %vm708_vm2, %v2927_v3  ;;  %v2932_v10 = vld [vmem:[%s3992_s0 + $0x1a0] sm:$0xff]   ;;  %v2933_v11 = vld [vmem:[%s3992_s0 + $0x18] sm:$0xff]   ;;  %v2934_v12 = vld [vmem:[%s3992_s0 + $0x1a8] sm:$0xff]  }
   0x4   :  { %v2935_v13 = vld [vmem:[%s3992_s0 + $0x20] sm:$0xff]   ;;  %v2936_v14 = vld [vmem:[%s3992_s0 + $0x1b0] sm:$0xff]   ;;  %v2937_v15 = vld [vmem:[%s3992_s0 + $0x28] sm:$0xff]  }
   0x5   :  { %2725 = vmatprep.subr.bf16.mxu0 %v1008_v6  ;;  %2923 = vmatprep.subr.bf16.mxu1 %v1008_v6  ;;  %v2938_v16 = vld [vmem:[%s3992_s0 + $0x1b8] sm:$0xff]   ;;  %v2939_v17 = vld [vmem:[%s3992_s0 + $0x30] sm:$0xff]   ;;  %v2940_v18 = vld [vmem:[%s3992_s0 + $0x1c0] sm:$0xff]  }
   0x6   :  { %2726 = vmatpush3.bf16.msra.mxu0 %v1008_v6  ;;  %2924 = vmatpush3.bf16.msra.mxu1 %v1008_v6  ;;  %v2941_v19 = vld [vmem:[%s3992_s0 + $0x38] sm:$0xff]   ;;  %v2942_v20 = vld [vmem:[%s3992_s0 + $0x1c8] sm:$0xff]   ;;  %v2943_v21 = vld [vmem:[%s3992_s0 + $0x40] sm:$0xff]  }
   0x7   :  { %v2944_v22 = vld [vmem:[%s3992_s0 + $0x1d0] sm:$0xff]   ;;  %v2945_v23 = vld [vmem:[%s3992_s0 + $0x48] sm:$0xff]   ;;  %v2946_v24 = vld [vmem:[%s3992_s0 + $0x1d8] sm:$0xff]  }
   0x8   :  { %v2947_v25 = vld [vmem:[%s3992_s0 + $0x50] sm:$0xff]   ;;  %v2948_v26 = vld [vmem:[%s3992_s0 + $0x1e0] sm:$0xff]   ;;  %v2949_v27 = vld [vmem:[%s3992_s0 + $0x58] sm:$0xff]  }
   0x9   :  { %2728 = vmatmul.mubr.msk.bf16.vlgmr.msra.gmra.mxu0 %vm708_vm2, %v2929_v7  ;;  %2828 = vmatmul.mubr.msk.bf16.vlgmr.msra.gmra.mxu1 %vm708_vm2, %v2930_v8  ;;  %v2950_v28 = vld [vmem:[%s3992_s0 + $0x1e8] sm:$0xff]   ;;  %v2951_v29 = vld [vmem:[%s3992_s0 + $0x60] sm:$0xff]   ;;  %v2952_v30 = vld [vmem:[%s3992_s0 + $0x1f0] sm:$0xff]  }
   0xa   :  { %2731 = vmatprep.mubr.msk.bf16.mxu0 %vm708_vm2, %v2931_v9  ;;  %2831 = vmatprep.mubr.msk.bf16.mxu1 %vm708_vm2, %v2932_v10  ;;  %v2953_v31 = vld [vmem:[%s3992_s0 + $0x68] sm:$0xff]   ;;  %v2954_v32 = vld [vmem:[%s3992_s0 + $0x1f8] sm:$0xff]   ;;  %v2955_v33 = vld [vmem:[%s3992_s0 + $0x70] sm:$0xff]  }
   0xb   :  { %v2956_v34 = vld [vmem:[%s3992_s0 + $0x200] sm:$0xff]   ;;  %v2957_v35 = vld [vmem:[%s3992_s0 + $0x78] sm:$0xff]   ;;  %v2958_v36 = vld [vmem:[%s3992_s0 + $0x208] sm:$0xff]  }
   0xc   :  { %v2959_v37 = vld [vmem:[%s3992_s0 + $0x80] sm:$0xff]   ;;  %v2960_v38 = vld [vmem:[%s3992_s0 + $0x210] sm:$0xff]   ;;  %v2961_v39 = vld [vmem:[%s3992_s0 + $0x88] sm:$0xff]  }
   0xd   :  { %v2962_v40 = vld [vmem:[%s3992_s0 + $0x218] sm:$0xff]   ;;  %v2963_v41 = vld [vmem:[%s3992_s0 + $0x90] sm:$0xff]   ;;  %v2964_v42 = vld [vmem:[%s3992_s0 + $0x220] sm:$0xff]  }
   0xe   :  { %v2965_v43 = vld [vmem:[%s3992_s0 + $0x98] sm:$0xff]   ;;  %v2966_v44 = vld [vmem:[%s3992_s0 + $0x228] sm:$0xff]   ;;  %v2967_v45 = vld [vmem:[%s3992_s0 + $0xa0] sm:$0xff]  }
   0xf   :  { %v2968_v46 = vld [vmem:[%s3992_s0 + $0x230] sm:$0xff]   ;;  %v2969_v47 = vld [vmem:[%s3992_s0 + $0xa8] sm:$0xff]   ;;  %v2970_v48 = vld [vmem:[%s3992_s0 + $0x238] sm:$0xff]  }
  0x10   :  { %v2971_v49 = vld [vmem:[%s3992_s0 + $0xb0] sm:$0xff]   ;;  %v2972_v50 = vld [vmem:[%s3992_s0 + $0x240] sm:$0xff]   ;;  %v2973_v51 = vld [vmem:[%s3992_s0 + $0xb8] sm:$0xff]  }
  0x11   :  { %2732 = vmatmul.mubr.msk.bf16.gmra.mxu0 %vm708_vm2, %v2933_v11  ;;  %2832 = vmatmul.mubr.msk.bf16.gmra.mxu1 %vm708_vm2, %v2934_v12  ;;  %v2974_v52 = vld [vmem:[%s3992_s0 + $0x248] sm:$0xff]   ;;  %v2975_v53 = vld [vmem:[%s3992_s0 + $0xc0] sm:$0xff]   ;;  %v2976_v54 = vld [vmem:[%s3992_s0 + $0x250] sm:$0xff]  }
  0x12   :  { %2735 = vmatprep.mubr.msk.bf16.mxu0 %vm708_vm2, %v2935_v13  ;;  %2835 = vmatprep.mubr.msk.bf16.mxu1 %vm708_vm2, %v2936_v14  ;;  %v2977_v55 = vld [vmem:[%s3992_s0 + $0xc8] sm:$0xff]   ;;  %v2978_v56 = vld [vmem:[%s3992_s0 + $0x258] sm:$0xff]   ;;  %v2979_v57 = vld [vmem:[%s3992_s0 + $0xd0] sm:$0xff]  }
  0x13   :  { %v2980_v58 = vld [vmem:[%s3992_s0 + $0x260] sm:$0xff]   ;;  %v2981_v59 = vld [vmem:[%s3992_s0 + $0xd8] sm:$0xff]   ;;  %v2982_v60 = vld [vmem:[%s3992_s0 + $0x268] sm:$0xff]  }
  0x14   :  { %v2983_v61 = vld [vmem:[%s3992_s0 + $0xe0] sm:$0xff]   ;;  %v2984_v62 = vld [vmem:[%s3992_s0 + $0x270] sm:$0xff]   ;;  %v2985_v63 = vld [vmem:[%s3992_s0 + $0xe8] sm:$0xff]  }
  0x15   :  { %v2986_v0 = vld [vmem:[%s3992_s0 + $0x278] sm:$0xff]   ;;  %v2987_v1 = vld [vmem:[%s3992_s0 + $0xf0] sm:$0xff]   ;;  %v2988_v2 = vld [vmem:[%s3992_s0 + $0x280] sm:$0xff]  }
  0x16   :  { %v2989_v3 = vld [vmem:[%s3992_s0 + $0xf8] sm:$0xff]   ;;  %v2990_v4 = vld [vmem:[%s3992_s0 + $0x288] sm:$0xff]   ;;  %v2991_v5 = vld [vmem:[%s3992_s0 + $0x100] sm:$0xff]  }
  0x17   :  { %v2992_v6 = vld [vmem:[%s3992_s0 + $0x290] sm:$0xff]   ;;  %v2993_v7 = vld [vmem:[%s3992_s0 + $0x108] sm:$0xff]   ;;  %v2994_v8 = vld [vmem:[%s3992_s0 + $0x298] sm:$0xff]  }
  0x18   :  { %v2995_v9 = vld [vmem:[%s3992_s0 + $0x110] sm:$0xff]   ;;  %v2996_v10 = vld [vmem:[%s3992_s0 + $0x2a0] sm:$0xff]   ;;  %v2997_v11 = vld [vmem:[%s3992_s0 + $0x118] sm:$0xff]  }
  0x19   :  { %2736 = vmatmul.mubr.msk.bf16.gmra.mxu0 %vm708_vm2, %v2937_v15  ;;  %2836 = vmatmul.mubr.msk.bf16.gmra.mxu1 %vm708_vm2, %v2938_v16  ;;  %v2998_v12 = vld [vmem:[%s3992_s0 + $0x2a8] sm:$0xff]   ;;  %v2999_v13 = vld [vmem:[%s3992_s0 + $0x120] sm:$0xff]   ;;  %v3000_v14 = vld [vmem:[%s3992_s0 + $0x2b0] sm:$0xff]  }
  0x1a   :  { %2739 = vmatprep.mubr.msk.bf16.mxu0 %vm708_vm2, %v2939_v17  ;;  %2839 = vmatprep.mubr.msk.bf16.mxu1 %vm708_vm2, %v2940_v18  ;;  %v3001_v15 = vld [vmem:[%s3992_s0 + $0x128] sm:$0xff]   ;;  %v3002_v16 = vld [vmem:[%s3992_s0 + $0x2b8] sm:$0xff]   ;;  %v3003_v17 = vld [vmem:[%s3992_s0 + $0x130] sm:$0xff]  }
  0x1b   :  { %v3004_v18 = vld [vmem:[%s3992_s0 + $0x2c0] sm:$0xff]  }
  0x21   :  { %2740 = vmatmul.mubr.msk.bf16.gmra.mxu0 %vm708_vm2, %v2941_v19  ;;  %2840 = vmatmul.mubr.msk.bf16.gmra.mxu1 %vm708_vm2, %v2942_v20  ;;  %v3005_v19 = vld [vmem:[%s3992_s0 + $0x138] sm:$0xff]   ;;  %v3006_v20 = vld [vmem:[%s3992_s0 + $0x2c8] sm:$0xff]  }
  0x22   :  { %2743 = vmatprep.mubr.msk.bf16.mxu0 %vm708_vm2, %v2943_v21  ;;  %2843 = vmatprep.mubr.msk.bf16.mxu1 %vm708_vm2, %v2944_v22  ;;  %v3007_v21 = vld [vmem:[%s3992_s0 + $0x140] sm:$0xff]   ;;  %v3008_v22 = vld [vmem:[%s3992_s0 + $0x2d0] sm:$0xff]  }
  0x29   :  { %2744 = vmatmul.mubr.msk.bf16.gmra.mxu0 %vm708_vm2, %v2945_v23  ;;  %2844 = vmatmul.mubr.msk.bf16.gmra.mxu1 %vm708_vm2, %v2946_v24  ;;  %v3009_v23 = vld [vmem:[%s3992_s0 + $0x148] sm:$0xff]   ;;  %v3010_v24 = vld [vmem:[%s3992_s0 + $0x2d8] sm:$0xff]  }
  0x2a   :  { %2747 = vmatprep.mubr.msk.bf16.mxu0 %vm708_vm2, %v2947_v25  ;;  %2847 = vmatprep.mubr.msk.bf16.mxu1 %vm708_vm2, %v2948_v26  ;;  %v3011_v25 = vld [vmem:[%s3992_s0 + $0x150] sm:$0xff]   ;;  %v3012_v26 = vld [vmem:[%s3992_s0 + $0x2e0] sm:$0xff]  }
  0x31   :  { %2748 = vmatmul.mubr.msk.bf16.gmra.mxu0 %vm708_vm2, %v2949_v27  ;;  %2848 = vmatmul.mubr.msk.bf16.gmra.mxu1 %vm708_vm2, %v2950_v28  ;;  %v3013_v27 = vld [vmem:[%s3992_s0 + $0x158] sm:$0xff]   ;;  %v3014_v28 = vld [vmem:[%s3992_s0 + $0x2e8] sm:$0xff]  }
  0x32   :  { %2751 = vmatprep.mubr.msk.bf16.mxu0 %vm708_vm2, %v2951_v29  ;;  %2851 = vmatprep.mubr.msk.bf16.mxu1 %vm708_vm2, %v2952_v30  ;;  %v3015_v29 = vld [vmem:[%s3992_s0 + $0x160] sm:$0xff]   ;;  %v3016_v30 = vld [vmem:[%s3992_s0 + $0x2f0] sm:$0xff]  }
  0x39   :  { %2752 = vmatmul.mubr.msk.bf16.gmra.mxu0 %vm708_vm2, %v2953_v31  ;;  %2852 = vmatmul.mubr.msk.bf16.gmra.mxu1 %vm708_vm2, %v2954_v32  ;;  %v3017_v31 = vld [vmem:[%s3992_s0 + $0x168] sm:$0xff]   ;;  %v3018_v32 = vld [vmem:[%s3992_s0 + $0x2f8] sm:$0xff]  }
  0x3a   :  { %2755 = vmatprep.mubr.msk.bf16.mxu0 %vm708_vm2, %v2955_v33  ;;  %2855 = vmatprep.mubr.msk.bf16.mxu1 %vm708_vm2, %v2956_v34  ;;  %v3019_v33 = vld [vmem:[%s3992_s0 + $0x170] sm:$0xff]   ;;  %v3020_v34 = vld [vmem:[%s3992_s0 + $0x300] sm:$0xff]  }
  0x41   :  { %2756 = vmatmul.mubr.msk.bf16.gmra.mxu0 %vm708_vm2, %v2957_v35  ;;  %2856 = vmatmul.mubr.msk.bf16.gmra.mxu1 %vm708_vm2, %v2958_v36  ;;  %v3021_v35 = vld [vmem:[%s3992_s0 + $0x178] sm:$0xff]   ;;  %v3022_v36 = vld [vmem:[%s3992_s0 + $0x308] sm:$0xff]  }
  0x42   :  { %2759 = vmatprep.mubr.msk.bf16.mxu0 %vm708_vm2, %v2959_v37  ;;  %2859 = vmatprep.mubr.msk.bf16.mxu1 %vm708_vm2, %v2960_v38  ;;  %v3023_v37 = vld [vmem:[%s3992_s0 + $0x180] sm:$0xff]   ;;  %v3024_v38 = vld [vmem:[%s3992_s0 + $0x188] sm:$0xff]  }
  0x49   :  { %2760 = vmatmul.mubr.msk.bf16.gmra.mxu0 %vm708_vm2, %v2961_v39  ;;  %2860 = vmatmul.mubr.msk.bf16.gmra.mxu1 %vm708_vm2, %v2962_v40 }
  0x4a   :  { %2763 = vmatprep.mubr.msk.bf16.mxu0 %vm708_vm2, %v2963_v41  ;;  %2863 = vmatprep.mubr.msk.bf16.mxu1 %vm708_vm2, %v2964_v42 }
  0x51   :  { %2764 = vmatmul.mubr.msk.bf16.gmra.mxu0 %vm708_vm2, %v2965_v43  ;;  %2864 = vmatmul.mubr.msk.bf16.gmra.mxu1 %vm708_vm2, %v2966_v44 }
  0x52   :  { %2767 = vmatprep.mubr.msk.bf16.mxu0 %vm708_vm2, %v2967_v45  ;;  %2867 = vmatprep.mubr.msk.bf16.mxu1 %vm708_vm2, %v2968_v46 }
  0x59   :  { %2768 = vmatmul.mubr.msk.bf16.gmra.mxu0 %vm708_vm2, %v2969_v47  ;;  %2868 = vmatmul.mubr.msk.bf16.gmra.mxu1 %vm708_vm2, %v2970_v48 }
  0x5a   :  { %2771 = vmatprep.mubr.msk.bf16.mxu0 %vm708_vm2, %v2971_v49  ;;  %2871 = vmatprep.mubr.msk.bf16.mxu1 %vm708_vm2, %v2972_v50 }
  0x61   :  { %2772 = vmatmul.mubr.msk.bf16.gmra.mxu0 %vm708_vm2, %v2973_v51  ;;  %2872 = vmatmul.mubr.msk.bf16.gmra.mxu1 %vm708_vm2, %v2974_v52 }
  0x62   :  { %2775 = vmatprep.mubr.msk.bf16.mxu0 %vm708_vm2, %v2975_v53  ;;  %2875 = vmatprep.mubr.msk.bf16.mxu1 %vm708_vm2, %v2976_v54 }
  0x69   :  { %2776 = vmatmul.mubr.msk.bf16.gmra.mxu0 %vm708_vm2, %v2977_v55  ;;  %2876 = vmatmul.mubr.msk.bf16.gmra.mxu1 %vm708_vm2, %v2978_v56 }
  0x6a   :  { %2779 = vmatprep.mubr.msk.bf16.mxu0 %vm708_vm2, %v2979_v57  ;;  %2879 = vmatprep.mubr.msk.bf16.mxu1 %vm708_vm2, %v2980_v58 }
  0x71   :  { %2780 = vmatmul.mubr.msk.bf16.gmra.mxu0 %vm708_vm2, %v2981_v59  ;;  %2880 = vmatmul.mubr.msk.bf16.gmra.mxu1 %vm708_vm2, %v2982_v60 }
  0x72   :  { %2783 = vmatprep.mubr.msk.bf16.mxu0 %vm708_vm2, %v2983_v61  ;;  %2883 = vmatprep.mubr.msk.bf16.mxu1 %vm708_vm2, %v2984_v62 }
  0x79   :  { %2784 = vmatmul.mubr.msk.bf16.gmra.mxu0 %vm708_vm2, %v2985_v63  ;;  %2884 = vmatmul.mubr.msk.bf16.gmra.mxu1 %vm708_vm2, %v2986_v0 }
  0x7a   :  { %2787 = vmatprep.mubr.msk.bf16.mxu0 %vm708_vm2, %v2987_v1  ;;  %2887 = vmatprep.mubr.msk.bf16.mxu1 %vm708_vm2, %v2988_v2 }
  0x81   :  { %2788 = vmatmul.mubr.msk.bf16.gmra.mxu0 %vm708_vm2, %v2989_v3  ;;  %2888 = vmatmul.mubr.msk.bf16.gmra.mxu1 %vm708_vm2, %v2990_v4 }
  0x82   :  { %2791 = vmatprep.mubr.msk.bf16.mxu0 %vm708_vm2, %v2991_v5  ;;  %2891 = vmatprep.mubr.msk.bf16.mxu1 %vm708_vm2, %v2992_v6 }
  0x89   :  { %2792 = vmatmul.mubr.msk.bf16.gmra.mxu0 %vm708_vm2, %v2993_v7  ;;  %2892 = vmatmul.mubr.msk.bf16.gmra.mxu1 %vm708_vm2, %v2994_v8 }
  0x8a   :  { %2795 = vmatprep.mubr.msk.bf16.mxu0 %vm708_vm2, %v2995_v9  ;;  %2895 = vmatprep.mubr.msk.bf16.mxu1 %vm708_vm2, %v2996_v10 }
  0x91   :  { %2796 = vmatmul.mubr.msk.bf16.gmra.mxu0 %vm708_vm2, %v2997_v11  ;;  %2896 = vmatmul.mubr.msk.bf16.gmra.mxu1 %vm708_vm2, %v2998_v12 }
  0x92   :  { %2799 = vmatprep.mubr.msk.bf16.mxu0 %vm708_vm2, %v2999_v13  ;;  %2899 = vmatprep.mubr.msk.bf16.mxu1 %vm708_vm2, %v3000_v14 }
  0x99   :  { %2800 = vmatmul.mubr.msk.bf16.gmra.mxu0 %vm708_vm2, %v3001_v15  ;;  %2900 = vmatmul.mubr.msk.bf16.gmra.mxu1 %vm708_vm2, %v3002_v16 }
  0x9a   :  { %2803 = vmatprep.mubr.msk.bf16.mxu0 %vm708_vm2, %v3003_v17  ;;  %2903 = vmatprep.mubr.msk.bf16.mxu1 %vm708_vm2, %v3004_v18 }
  0xa1   :  { %2804 = vmatmul.mubr.msk.bf16.gmra.mxu0 %vm708_vm2, %v3005_v19  ;;  %2904 = vmatmul.mubr.msk.bf16.gmra.mxu1 %vm708_vm2, %v3006_v20 }
  0xa2   :  { %2807 = vmatprep.mubr.msk.bf16.mxu0 %vm708_vm2, %v3007_v21  ;;  %2907 = vmatprep.mubr.msk.bf16.mxu1 %vm708_vm2, %v3008_v22 }
  0xa9   :  { %2808 = vmatmul.mubr.msk.bf16.gmra.mxu0 %vm708_vm2, %v3009_v23  ;;  %2908 = vmatmul.mubr.msk.bf16.gmra.mxu1 %vm708_vm2, %v3010_v24 }
  0xaa   :  { %2811 = vmatprep.mubr.msk.bf16.mxu0 %vm708_vm2, %v3011_v25  ;;  %2911 = vmatprep.mubr.msk.bf16.mxu1 %vm708_vm2, %v3012_v26 }
  0xb1   :  { %2812 = vmatmul.mubr.msk.bf16.gmra.mxu0 %vm708_vm2, %v3013_v27  ;;  %2912 = vmatmul.mubr.msk.bf16.gmra.mxu1 %vm708_vm2, %v3014_v28 }
  0xb2   :  { %2815 = vmatprep.mubr.msk.bf16.mxu0 %vm708_vm2, %v3015_v29  ;;  %2915 = vmatprep.mubr.msk.bf16.mxu1 %vm708_vm2, %v3016_v30 }
  0xb9   :  { %2816 = vmatmul.mubr.msk.bf16.gmra.mxu0 %vm708_vm2, %v3017_v31  ;;  %2916 = vmatmul.mubr.msk.bf16.gmra.mxu1 %vm708_vm2, %v3018_v32 }
  0xba   :  { %2819 = vmatprep.mubr.msk.bf16.mxu0 %vm708_vm2, %v3019_v33  ;;  %2919 = vmatprep.mubr.msk.bf16.mxu1 %vm708_vm2, %v3020_v34 }
  0xc1   :  { %2820 = vmatmul.mubr.msk.bf16.gmra.mxu0 %vm708_vm2, %v3021_v35  ;;  %2920 = vmatmul.mubr.msk.bf16.gmra.mxu1 %vm708_vm2, %v3022_v36 }
  0xc2   :  { %2823 = vmatprep.mubr.msk.bf16.mxu0 %vm708_vm2, %v3023_v37 }
  0xc9   :  { %v3440_v39 = vpop.f32.mrf.mxu0  ;;  %2824 = vmatmul.mubr.msk.bf16.gmra.mxu0 %vm708_vm2, %v3024_v38  ;;  %v3443_v40 = vpop.f32.mrf.mxu1 }
  0xcb   :  { %v3445_v41 = vpop.f32.mrf.mxu0  ;;  %v3447_v42 = vpop.f32.mrf.mxu1 }
  0xcc   :  { %3995 = vst [vmem:[#allocation2_spill] sm:$0xff] %v3445_v41 }
  0xcd   :  { %v3449_v43 = vpop.f32.mrf.mxu0  ;;  %v3451_v44 = vpop.f32.mrf.mxu1 }
  0xcf   :  { %v3453_v45 = vpop.f32.mrf.mxu0  ;;  %v3455_v46 = vpop.f32.mrf.mxu1 }
  0xd0   :  { %3996 = vst [vmem:[#allocation3_spill] sm:$0xff] %v3453_v45 }
  0xd1   :  { %v3457_v47 = vpop.f32.mrf.mxu0  ;;  %v3459_v48 = vpop.f32.mrf.mxu1 }
  0xd3   :  { %v3461_v49 = vpop.f32.mrf.mxu0  ;;  %v3463_v50 = vpop.f32.mrf.mxu1 }
  0xd5   :  { %v3465_v51 = vpop.f32.mrf.mxu0  ;;  %v3467_v52 = vpop.f32.mrf.mxu1 }
  0xd7   :  { %v3469_v53 = vpop.f32.mrf.mxu0  ;;  %v3471_v54 = vpop.f32.mrf.mxu1 }
  0xd9   :  { %v3473_v55 = vpop.f32.mrf.mxu0  ;;  %v3475_v56 = vpop.f32.mrf.mxu1 }
  0xdb   :  { %v3477_v57 = vpop.f32.mrf.mxu0  ;;  %v3479_v58 = vpop.f32.mrf.mxu1 }
  0xdd   :  { %v3481_v59 = vpop.f32.mrf.mxu0  ;;  %v3483_v60 = vpop.f32.mrf.mxu1 }
  0xdf   :  { %v3485_v61 = vpop.f32.mrf.mxu0  ;;  %v3487_v62 = vpop.f32.mrf.mxu1 }
  0xe1   :  { %v3489_v63 = vpop.f32.mrf.mxu0  ;;  %v3491_v0 = vpop.f32.mrf.mxu1 }
  0xe3   :  { %v3493_v1 = vpop.f32.mrf.mxu0  ;;  %v3495_v2 = vpop.f32.mrf.mxu1 }
  0xe5   :  { %v3497_v3 = vpop.f32.mrf.mxu0  ;;  %v3499_v4 = vpop.f32.mrf.mxu1 }
  0xe7   :  { %v3501_v5 = vpop.f32.mrf.mxu0  ;;  %v3503_v6 = vpop.f32.mrf.mxu1 }
  0xe9   :  { %v3505_v7 = vpop.f32.mrf.mxu0  ;;  %v3507_v8 = vpop.f32.mrf.mxu1 }
  0xeb   :  { %v3509_v9 = vpop.f32.mrf.mxu0  ;;  %v3511_v10 = vpop.f32.mrf.mxu1 }
  0xed   :  { %v3513_v11 = vpop.f32.mrf.mxu0  ;;  %v3515_v12 = vpop.f32.mrf.mxu1 }
  0xef   :  { %v3517_v13 = vpop.f32.mrf.mxu0  ;;  %v3519_v14 = vpop.f32.mrf.mxu1 }
  0xf1   :  { %v3521_v15 = vpop.f32.mrf.mxu0  ;;  %v3523_v16 = vpop.f32.mrf.mxu1 }
  0xf2   :  { %3997 = vst [vmem:[#allocation4_spill] sm:$0xff] %v3523_v16 }
  0xf3   :  { %v3525_v17 = vpop.f32.mrf.mxu0  ;;  %v3527_v18 = vpop.f32.mrf.mxu1 }
  0xf5   :  { %v3529_v19 = vpop.f32.mrf.mxu0  ;;  %v3531_v20 = vpop.f32.mrf.mxu1 }
  0xf6   :  { %3998 = vst [vmem:[#allocation5_spill] sm:$0xff] %v3531_v20 }
  0xf7   :  { %v3533_v21 = vpop.f32.mrf.mxu0  ;;  %v3535_v22 = vpop.f32.mrf.mxu1 }
  0xf9   :  { %v3537_v23 = vpop.f32.mrf.mxu0  ;;  %v3539_v24 = vpop.f32.mrf.mxu1 }
  0xfa   :  { %3999 = vst [vmem:[#allocation6_spill] sm:$0xff] %v3537_v23  ;;  %4000 = vst [vmem:[#allocation7_spill] sm:$0xff] %v3539_v24 }
  0xfb   :  { %v3541_v25 = vpop.f32.mrf.mxu0  ;;  %v3543_v26 = vpop.f32.mrf.mxu1 }
  0xfc   :  { %4001 = vst [vmem:[#allocation8_spill] sm:$0xff] %v3541_v25  ;;  %4002 = vst [vmem:[#allocation9_spill] sm:$0xff] %v3543_v26 }
  0xfd   :  { %v3545_v27 = vpop.f32.mrf.mxu0  ;;  %v3547_v28 = vpop.f32.mrf.mxu1 }
  0xfe   :  { %4003 = vst [vmem:[#allocation10_spill] sm:$0xff] %v3545_v27  ;;  %4004 = vst [vmem:[#allocation11_spill] sm:$0xff] %v3547_v28 }
  0xff   :  { %v3549_v29 = vpop.f32.mrf.mxu0  ;;  %v3551_v30 = vpop.f32.mrf.mxu1 }
 0x100   :  { %4005 = vst [vmem:[#allocation12_spill] sm:$0xff] %v3551_v30 }
 0x101   :  { %v3553_v31 = vpop.f32.mrf.mxu0  ;;  %v3555_v32 = vpop.f32.mrf.mxu1 }
 0x102   :  { %4006 = vst [vmem:[#allocation13_spill] sm:$0xff] %v3553_v31  ;;  %4007 = vst [vmem:[#allocation14_spill] sm:$0xff] %v3555_v32 }
 0x103   :  { %v3557_v33 = vpop.f32.mrf.mxu0  ;;  %v3559_v34 = vpop.f32.mrf.mxu1 }
 0x104   :  { %4008 = vst [vmem:[#allocation15_spill] sm:$0xff] %v3557_v33  ;;  %4009 = vst [vmem:[#allocation16_spill] sm:$0xff] %v3559_v34 }
 0x105   :  { %v3561_v35 = vpop.f32.mrf.mxu0  ;;  %v3563_v36 = vpop.f32.mrf.mxu1 }
 0x106   :  { %4010 = vst [vmem:[#allocation17_spill] sm:$0xff] %v3561_v35  ;;  %4011 = vst [vmem:[#allocation18_spill] sm:$0xff] %v3563_v36 }
 0x107   :  { %v3565_v37 = vpop.f32.mrf.mxu0  ;;  %v3567_v38 = vpop.f32.mrf.mxu1 }
 0x108   :  { %4012 = vst [vmem:[#allocation19_spill] sm:$0xff] %v3565_v37  ;;  %4013 = vst [vmem:[#allocation20_spill] sm:$0xff] %v3567_v38 }
 0x109   :  { %v3569_v45 = vpop.f32.mrf.mxu0  ;;  %v3571_v41 = vpop.f32.mrf.mxu1 }
 0x10a   :  { %4014 = vst [vmem:[#allocation21_spill] sm:$0xff] %v3569_v45  ;;  %4015 = vst [vmem:[#allocation22_spill] sm:$0xff] %v3571_v41 }
 0x10b   :  { %v3573_v24 = vpop.f32.mrf.mxu0  ;;  %v3575_v31 = vpop.f32.mrf.mxu1 }
 0x10c   :  { %4016 = vst [vmem:[#allocation23_spill] sm:$0xff] %v3573_v24  ;;  %4017 = vst [vmem:[#allocation24_spill] sm:$0xff] %v3575_v31 }
 0x10d   :  { %v3577_v32 = vpop.f32.mrf.mxu0  ;;  %v3579_v33 = vpop.f32.mrf.mxu1 }
 0x10e   :  { %4018 = vst [vmem:[#allocation25_spill] sm:$0xff] %v3577_v32  ;;  %4019 = vst [vmem:[#allocation26_spill] sm:$0xff] %v3579_v33 }
 0x10f   :  { %v3581_v34 = vpop.f32.mrf.mxu0  ;;  %v3583_v35 = vpop.f32.mrf.mxu1 }
 0x110   :  { %4020 = vst [vmem:[#allocation27_spill] sm:$0xff] %v3581_v34  ;;  %4021 = vst [vmem:[#allocation28_spill] sm:$0xff] %v3583_v35 }
 0x111   :  { %v3585_v36 = vpop.f32.mrf.mxu0  ;;  %v3587_v28 = vpop.f32.mrf.mxu1 }
 0x112   :  { %4022 = vst [vmem:[#allocation29_spill] sm:$0xff] %v3585_v36  ;;  %4023 = vst [vmem:[#allocation30_spill] sm:$0xff] %v3587_v28 }
 0x113   :  { %v3589_v38 = vpop.f32.mrf.mxu0  ;;  %v3591_v45 = vpop.f32.mrf.mxu1 }
 0x114   :  { %4024 = vst [vmem:[#allocation31_spill] sm:$0xff] %v3589_v38  ;;  %4025 = vst [vmem:[#allocation32_spill] sm:$0xff] %v3591_v45 }
 0x115   :  { %v3593_v41 = vpop.f32.mrf.mxu0  ;;  %v3595_v24 = vpop.f32.mrf.mxu1 }
 0x116   :  { %4026 = vst [vmem:[#allocation33_spill] sm:$0xff] %v3593_v41  ;;  %4027 = vst [vmem:[#allocation34_spill] sm:$0xff] %v3595_v24 }
 0x117   :  { %v3597_v31 = vpop.f32.mrf.mxu0  ;;  %v3599_v32 = vpop.f32.mrf.mxu1 }
 0x118   :  { %4028 = vst [vmem:[#allocation35_spill] sm:$0xff] %v3597_v31  ;;  %4029 = vst [vmem:[#allocation36_spill] sm:$0xff] %v3599_v32 }
 0x119   :  { %v3601_v33 = vpop.f32.mrf.mxu0  ;;  %v3603_v34 = vpop.f32.mrf.mxu1 }
 0x11a   :  { %4030 = vst [vmem:[#allocation37_spill] sm:$0xff] %v3601_v33  ;;  %4031 = vst [vmem:[#allocation38_spill] sm:$0xff] %v3603_v34 }
 0x11b   :  { %v3605_v35 = vpop.f32.mrf.mxu0  ;;  %v3607_v36 = vpop.f32.mrf.mxu1 }
 0x11c   :  { %4032 = vst [vmem:[#allocation39_spill] sm:$0xff] %v3605_v35  ;;  %4033 = vst [vmem:[#allocation40_spill] sm:$0xff] %v3607_v36 }
 0x11d   :  { %v3609_v28 = vpop.f32.mrf.mxu0  ;;  %v3611_v38 = vpop.f32.mrf.mxu1 }
 0x11e   :  { %4034 = vst [vmem:[#allocation41_spill] sm:$0xff] %v3609_v28  ;;  %4035 = vst [vmem:[#allocation42_spill] sm:$0xff] %v3611_v38 }
 0x11f   :  { %v3613_v45 = vpop.f32.mrf.mxu0  ;;  %v3615_v41 = vpop.f32.mrf.mxu1 }
 0x120   :  { %4036 = vst [vmem:[#allocation43_spill] sm:$0xff] %v3613_v45  ;;  %4037 = vst [vmem:[#allocation44_spill] sm:$0xff] %v3615_v41 }
 0x121   :  { %v3617_v24 = vpop.f32.mrf.mxu0  ;;  %v3619_v31 = vpop.f32.mrf.mxu1 }
 0x122   :  { %4038 = vst [vmem:[#allocation45_spill] sm:$0xff] %v3617_v24  ;;  %4039 = vst [vmem:[#allocation46_spill] sm:$0xff] %v3619_v31 }
 0x123   :  { %v3621_v32 = vpop.f32.mrf.mxu0  ;;  %v3623_v33 = vpop.f32.mrf.mxu1 }
 0x124   :  { %4040 = vst [vmem:[#allocation47_spill] sm:$0xff] %v3621_v32  ;;  %4041 = vst [vmem:[#allocation48_spill] sm:$0xff] %v3623_v33 }
 0x125   :  { %v3625_v34 = vpop.f32.mrf.mxu0  ;;  %v3627_v35 = vpop.f32.mrf.mxu1 }
 0x126   :  { %4042 = vst [vmem:[#allocation49_spill] sm:$0xff] %v3625_v34  ;;  %4043 = vst [vmem:[#allocation50_spill] sm:$0xff] %v3627_v35 }
 0x127   :  { %v3629_v36 = vpop.f32.mrf.mxu0  ;;  %v3631_v28 = vpop.f32.mrf.mxu1 }
 0x128   :  { %4044 = vst [vmem:[#allocation51_spill] sm:$0xff] %v3629_v36  ;;  %4045 = vst [vmem:[#allocation52_spill] sm:$0xff] %v3631_v28  ;;  %v3646_v28 = vld [vmem:[%s3993_s2] ss:$0 sm:$0xff] }
 0x129   :  { %v3633_v38 = vpop.f32.mrf.mxu0  ;;  %v2877_v45 = vpop.f32.mrf.mxu1 }
 0x12a   :  { %4046 = vst [vmem:[#allocation53_spill] sm:$0xff] %v3633_v38 }
 0x12b   :  { %v3635_v41 = vpop.f32.mrf.mxu0  ;;  %v3637_v24 = vpop.f32.mrf.mxu1 }
 0x12c   :  { %4047 = vst [vmem:[#allocation54_spill] sm:$0xff] %v3635_v41  ;;  %4048 = vst [vmem:[#allocation55_spill] sm:$0xff] %v3637_v24  ;;  %v1879_v41 = vmax.f32 %v3455_v46, %v2877_v45 }
 0x12d   :  { %v2778_v31 = vpop.f32.mrf.mxu0  ;;  %v2878_v27 = vpop.f32.mrf.mxu1 }
 0x12e   :  { %v1829_v34 = vmax.f32 %v3440_v39, %v2778_v31  ;;  %v1880_v20 = vmax.f32 %v3443_v40, %v2878_v27 }
 0x12f   :  { %v3639_v32 = vpop.f32.mrf.mxu0  ;;  %v1639_v33 = vpop.f32.mrf.mxu1 }
 0x130   :  { %4049 = vst [vmem:[#allocation56_spill] sm:$0xff] %v3639_v32  ;;  %v1878_v35 = vmax.f32 %v3447_v42, %v1639_v33 }
 0x131   :  { %v2781_v38 = vpop.f32.mrf.mxu0  ;;  %v2881_v36 = vpop.f32.mrf.mxu1 }
 0x132   :  { %v1927_v37 = vmax.f32 %v1829_v34, %v1878_v35  ;;  %v1832_v32 = vmax.f32 %v3469_v53, %v2781_v38 }
 0x133   :  { %v1252_v24 = vpop.f32.mrf.mxu0  ;;  %v1652_v30 = vpop.f32.mrf.mxu1 }
 0x134   :  { %v1983_v26 = vadd.f32 %v3646_v28, %v1927_v37  ;;  %v1830_v39 = vmax.f32 %v3449_v43, %v1252_v24  ;;  %v1881_v42 = vmax.f32 %v3451_v44, %v1652_v30 }
 0x135   :  { %v2782_v31 = vpop.f32.mrf.mxu0  ;;  %v2882_v33 = vpop.f32.mrf.mxu1 }
 0x136   :  { %v2032_v23 = vmax.f32 %v1983_v26, 0.0  ;;  %v1928_v25 = vmax.f32 %v1830_v39, %v1879_v41  ;;  %v1930_v16 = vmax.f32 %v1832_v32, %v1881_v42  ;;  %v1833_v43 = vmax.f32 %v3457_v47, %v2782_v31 }
 0x137   :  { %v1255_v34 = vpop.f32.mrf.mxu0  ;;  %v1655_v45 = vpop.f32.mrf.mxu1 }
 0x138   :  { %v2579_v46 = vpack.c.bf16 %v2032_v23, %v2032_v23  ;;  %v1984_v35 = vadd.f32 %v3646_v28, %v1928_v25  ;;  %v1986_v37 = vadd.f32 %v3646_v28, %v1930_v16  ;;  %v1831_v53 = vmax.f32 %v3461_v49, %v1255_v34 }
 0x139   :  { %v1882_v44 = vmax.f32 %v3463_v50, %v1655_v45  ;;  %v2785_v24 = vpop.f32.mrf.mxu0  ;;  %v2885_v26 = vpop.f32.mrf.mxu1  ;;  %v1883_v25 = vmax.f32 %v3471_v54, %v2881_v36 }
 0x13a   :  { %2279 = vst.msk [vmem:[%s3994_s3 + $0x8] sm:$0xf] %vm2276_vm3, %v2579_v46  ;;  %v2033_v40 = vmax.f32 %v1984_v35, 0.0  ;;  %v2035_v41 = vmax.f32 %v1986_v37, 0.0  ;;  %v1929_v23 = vmax.f32 %v1831_v53, %v1880_v20  ;;  %v1836_v39 = vmax.f32 %v3485_v61, %v2785_v24 }
 0x13b   :  { %v1931_v27 = vmax.f32 %v1833_v43, %v1882_v44  ;;  %v1268_v16 = vpop.f32.mrf.mxu0  ;;  %v1668_v30 = vpop.f32.mrf.mxu1  ;;  %v1884_v20 = vmax.f32 %v3459_v48, %v2882_v33 }
 0x13c   :  { %v2580_v49 = vpack.c.bf16 %v2033_v40, %v2033_v40  ;;  %v2582_v32 = vpack.c.bf16 %v2035_v41, %v2035_v41  ;;  %v1985_v47 = vadd.f32 %v3646_v28, %v1929_v23  ;;  %v1834_v50 = vmax.f32 %v3465_v51, %v1268_v16 }
 0x13d   :  { %v1987_v38 = vadd.f32 %v3646_v28, %v1931_v27  ;;  %v1885_v42 = vmax.f32 %v3467_v52, %v1668_v30  ;;  %v2786_v31 = vpop.f32.mrf.mxu0  ;;  %v2886_v34 = vpop.f32.mrf.mxu1 }
 0x13e   :  { %2280 = vst.msk [vmem:[%s3994_s3 + $0xc] sm:$0xf] %vm2276_vm3, %v2580_v49  ;;  %2282 = vst.msk [vmem:[%s3994_s3 + $0x14] sm:$0xf] %vm2276_vm3, %v2582_v32  ;;  %v2034_v54 = vmax.f32 %v1985_v47, 0.0  ;;  %v1932_v51 = vmax.f32 %v1834_v50, %v1883_v25  ;;  %v1837_v52 = vmax.f32 %v3473_v55, %v2786_v31 }
 0x13f   :  { %v2036_v36 = vmax.f32 %v1987_v38, 0.0  ;;  %v1934_v61 = vmax.f32 %v1836_v39, %v1885_v42  ;;  %v1271_v45 = vpop.f32.mrf.mxu0  ;;  %v1671_v46 = vpop.f32.mrf.mxu1 }
 0x140   :  { %v2581_v35 = vpack.c.bf16 %v2034_v54, %v2034_v54  ;;  %v1988_v37 = vadd.f32 %v3646_v28, %v1932_v51  ;;  %v1835_v53 = vmax.f32 %v3477_v57, %v1271_v45  ;;  %v1886_v43 = vmax.f32 %v3479_v58, %v1671_v46 }
 0x141   :  { %v2583_v44 = vpack.c.bf16 %v2036_v36, %v2036_v36  ;;  %v1990_v24 = vadd.f32 %v3646_v28, %v1934_v61  ;;  %v2789_v40 = vpop.f32.mrf.mxu0  ;;  %v2889_v41 = vpop.f32.mrf.mxu1  ;;  %v1887_v57 = vmax.f32 %v3487_v62, %v2885_v26 }
 0x142   :  { %2281 = vst.msk [vmem:[%s3994_s3 + $0x10] sm:$0xf] %vm2276_vm3, %v2581_v35  ;;  %v2037_v48 = vmax.f32 %v1988_v37, 0.0  ;;  %v1933_v55 = vmax.f32 %v1835_v53, %v1884_v20  ;;  %v1935_v33 = vmax.f32 %v1837_v52, %v1886_v43  ;;  %v1840_v47 = vmax.f32 %v3501_v5, %v2789_v40 }
 0x143   :  { %2283 = vst.msk [vmem:[%s3994_s3 + $0x18] sm:$0xf] %vm2276_vm3, %v2583_v44  ;;  %v2039_v58 = vmax.f32 %v1990_v24, 0.0  ;;  %v1284_v23 = vpop.f32.mrf.mxu0  ;;  %v1684_v25 = vpop.f32.mrf.mxu1 }
 0x144   :  { %v2584_v27 = vpack.c.bf16 %v2037_v48, %v2037_v48  ;;  %v1989_v16 = vadd.f32 %v3646_v28, %v1933_v55  ;;  %v1991_v30 = vadd.f32 %v3646_v28, %v1935_v33  ;;  %v1838_v49 = vmax.f32 %v3481_v59, %v1284_v23 }
 0x145   :  { %v2586_v32 = vpack.c.bf16 %v2039_v58, %v2039_v58  ;;  %v1889_v50 = vmax.f32 %v3483_v60, %v1684_v25  ;;  %v2790_v38 = vpop.f32.mrf.mxu0  ;;  %v2890_v39 = vpop.f32.mrf.mxu1  ;;  %v1888_v59 = vmax.f32 %v3475_v56, %v2886_v34  ;;  %v1891_v34 = vmax.f32 %v3503_v6, %v2889_v41 }
 0x146   :  { %2284 = vst.msk [vmem:[%s3994_s3 + $0x1c] sm:$0xf] %vm2276_vm3, %v2584_v27  ;;  %v2038_v62 = vmax.f32 %v1989_v16, 0.0  ;;  %v2040_v26 = vmax.f32 %v1991_v30, 0.0  ;;  %v1936_v42 = vmax.f32 %v1838_v49, %v1887_v57  ;;  %v1841_v52 = vmax.f32 %v3489_v63, %v2790_v38 }
 0x147   :  { %2286 = vst.msk [vmem:[%s3994_s3 + $0x24] sm:$0xf] %vm2276_vm3, %v2586_v32  ;;  %v1938_v5 = vmax.f32 %v1840_v47, %v1889_v50  ;;  %v1287_v31 = vpop.f32.mrf.mxu0  ;;  %v1687_v60 = vpop.f32.mrf.mxu1 }
 0x148   :  { %v2585_v54 = vpack.c.bf16 %v2038_v62, %v2038_v62  ;;  %v2587_v51 = vpack.c.bf16 %v2040_v26, %v2040_v26  ;;  %v1992_v20 = vadd.f32 %v3646_v28, %v1936_v42  ;;  %v1839_v36 = vmax.f32 %v3493_v1, %v1287_v31 }
 0x149   :  { %v1994_v61 = vadd.f32 %v3646_v28, %v1938_v5  ;;  %v1890_v45 = vmax.f32 %v3495_v2, %v1687_v60  ;;  %v2793_v46 = vpop.f32.mrf.mxu0  ;;  %v2893_v35 = vpop.f32.mrf.mxu1 }
 0x14a   :  { %2285 = vst.msk [vmem:[%s3994_s3 + $0x20] sm:$0xf] %vm2276_vm3, %v2585_v54  ;;  %2287 = vst.msk [vmem:[%s3994_s3 + $0x28] sm:$0xf] %vm2276_vm3, %v2587_v51  ;;  %v2041_v56 = vmax.f32 %v1992_v20, 0.0  ;;  %v1937_v1 = vmax.f32 %v1839_v36, %v1888_v59  ;;  %v1844_v2 = vmax.f32 %v3517_v13, %v2793_v46 }
 0x14b   :  { %v2043_v37 = vmax.f32 %v1994_v61, 0.0  ;;  %v1939_v63 = vmax.f32 %v1841_v52, %v1890_v45  ;;  %v1300_v53 = vpop.f32.mrf.mxu0  ;;  %v1700_v43 = vpop.f32.mrf.mxu1 }
 0x14c   :  { %v2588_v44 = vpack.c.bf16 %v2041_v56, %v2041_v56  ;;  %v1993_v24 = vadd.f32 %v3646_v28, %v1937_v1  ;;  %v1842_v40 = vmax.f32 %v3497_v3, %v1300_v53  ;;  %v1893_v48 = vmax.f32 %v3499_v4, %v1700_v43 }
 0x14d   :  { %v2590_v55 = vpack.c.bf16 %v2043_v37, %v2043_v37  ;;  %v1995_v33 = vadd.f32 %v3646_v28, %v1939_v63  ;;  %v2794_v57 = vpop.f32.mrf.mxu0  ;;  %v2894_v58 = vpop.f32.mrf.mxu1  ;;  %v1892_v3 = vmax.f32 %v3491_v0, %v2890_v39 }
 0x14e   :  { %2288 = vst.msk [vmem:[%s3994_s3 + $0x2c] sm:$0xf] %vm2276_vm3, %v2588_v44  ;;  %v2042_v6 = vmax.f32 %v1993_v24, 0.0  ;;  %v1940_v13 = vmax.f32 %v1842_v40, %v1891_v34  ;;  %v1942_v41 = vmax.f32 %v1844_v2, %v1893_v48  ;;  %v1845_v47 = vmax.f32 %v3505_v7, %v2794_v57 }
 0x14f   :  { %2290 = vst.msk [vmem:[%s3994_s3 + $0x34] sm:$0xf] %vm2276_vm3, %v2590_v55  ;;  %v2044_v4 = vmax.f32 %v1995_v33, 0.0  ;;  %v1303_v23 = vpop.f32.mrf.mxu0  ;;  %v1703_v25 = vpop.f32.mrf.mxu1  ;;  %v1896_v52 = vmax.f32 %v3507_v8, %v2894_v58 }
 0x150   :  { %v2589_v27 = vpack.c.bf16 %v2042_v6, %v2042_v6  ;;  %v1996_v16 = vadd.f32 %v3646_v28, %v1940_v13  ;;  %v1998_v30 = vadd.f32 %v3646_v28, %v1942_v41  ;;  %v1843_v49 = vmax.f32 %v3509_v9, %v1303_v23  ;;  %v4050_v13 = vld [vmem:[#allocation5_spill] sm:$0xff] }
 0x151   :  { %v2591_v32 = vpack.c.bf16 %v2044_v4, %v2044_v4  ;;  %v1894_v50 = vmax.f32 %v3511_v10, %v1703_v25  ;;  %v2797_v38 = vpop.f32.mrf.mxu0  ;;  %v2897_v62 = vpop.f32.mrf.mxu1  ;;  %v1895_v9 = vmax.f32 %v3519_v14, %v2893_v35 }
 0x152   :  { %2289 = vst.msk [vmem:[%s3994_s3 + $0x30] sm:$0xf] %vm2276_vm3, %v2589_v27  ;;  %v2045_v0 = vmax.f32 %v1996_v16, 0.0  ;;  %v2047_v39 = vmax.f32 %v1998_v30, 0.0  ;;  %v1941_v26 = vmax.f32 %v1843_v49, %v1892_v3  ;;  %v1848_v51 = vmax.f32 %v3533_v21, %v2797_v38 }
 0x153   :  { %2291 = vst.msk [vmem:[%s3994_s3 + $0x38] sm:$0xf] %vm2276_vm3, %v2591_v32  ;;  %v1943_v7 = vmax.f32 %v1845_v47, %v1894_v50  ;;  %v1316_v42 = vpop.f32.mrf.mxu0  ;;  %v1716_v10 = vpop.f32.mrf.mxu1  ;;  %v4052_v50 = vld [vmem:[#allocation8_spill] sm:$0xff] }
 0x154   :  { %v2592_v59 = vpack.c.bf16 %v2045_v0, %v2045_v0  ;;  %v2594_v5 = vpack.c.bf16 %v2047_v39, %v2047_v39  ;;  %v1997_v31 = vadd.f32 %v3646_v28, %v1941_v26  ;;  %v1846_v60 = vmax.f32 %v3513_v11, %v1316_v42  ;;  %v4053_v0 = vld [vmem:[#allocation6_spill] sm:$0xff]  ;;  %v4054_v26 = vld [vmem:[#allocation9_spill] sm:$0xff] }
 0x155   :  { %v1999_v54 = vadd.f32 %v3646_v28, %v1943_v7  ;;  %v1897_v20 = vmax.f32 %v3515_v12, %v1716_v10  ;;  %v2798_v36 = vpop.f32.mrf.mxu0  ;;  %v2898_v61 = vpop.f32.mrf.mxu1 }
 0x156   :  { %2292 = vst.msk [vmem:[%s3994_s3 + $0x3c] sm:$0xf] %vm2276_vm3, %v2592_v59  ;;  %2294 = vst.msk [vmem:[%s3994_s3 + $0x44] sm:$0xf] %vm2276_vm3, %v2594_v5  ;;  %v2046_v14 = vmax.f32 %v1997_v31, 0.0  ;;  %v1944_v11 = vmax.f32 %v1846_v60, %v1895_v9  ;;  %v1849_v12 = vmax.f32 %v3521_v15, %v2798_v36  ;;  %v4055_v5 = vld [vmem:[#allocation12_spill] sm:$0xff] }
 0x157   :  { %v2048_v45 = vmax.f32 %v1999_v54, 0.0  ;;  %v1946_v21 = vmax.f32 %v1848_v51, %v1897_v20  ;;  %v1319_v46 = vpop.f32.mrf.mxu0  ;;  %v1719_v35 = vpop.f32.mrf.mxu1  ;;  %v4056_v51 = vld [vmem:[#allocation19_spill] sm:$0xff] }
 0x158   :  { %v2593_v56 = vpack.c.bf16 %v2046_v14, %v2046_v14  ;;  %v2000_v1 = vadd.f32 %v3646_v28, %v1944_v11  ;;  %v1847_v34 = vmax.f32 %v3525_v17, %v1319_v46  ;;  %v1898_v37 = vmax.f32 %v3527_v18, %v1719_v35 }
 0x159   :  { %v2595_v63 = vpack.c.bf16 %v2048_v45, %v2048_v45  ;;  %v2002_v2 = vadd.f32 %v3646_v28, %v1946_v21  ;;  %v2801_v53 = vpop.f32.mrf.mxu0  ;;  %v2901_v43 = vpop.f32.mrf.mxu1  ;;  %v1899_v17 = vmax.f32 %v3535_v22, %v2897_v62  ;;  %v4058_v21 = vld [vmem:[#allocation11_spill] sm:$0xff] }
 0x15a   :  { %2293 = vst.msk [vmem:[%s3994_s3 + $0x40] sm:$0xf] %vm2276_vm3, %v2593_v56  ;;  %v2049_v8 = vmax.f32 %v2000_v1, 0.0  ;;  %v1945_v15 = vmax.f32 %v1847_v34, %v1896_v52  ;;  %v1947_v44 = vmax.f32 %v1849_v12, %v1898_v37  ;;  %v1852_v6 = vmax.f32 %v3549_v29, %v2801_v53  ;;  %v4057_v52 = vld [vmem:[#allocation10_spill] sm:$0xff] }
 0x15b   :  { %2295 = vst.msk [vmem:[%s3994_s3 + $0x48] sm:$0xf] %vm2276_vm3, %v2595_v63  ;;  %v2051_v18 = vmax.f32 %v2002_v2, 0.0  ;;  %v1332_v24 = vpop.f32.mrf.mxu0  ;;  %v1732_v40 = vpop.f32.mrf.mxu1  ;;  %v1903_v31 = vmax.f32 %v4055_v5, %v2901_v43  ;;  %v4059_v2 = vld [vmem:[#allocation7_spill] sm:$0xff] }
 0x15c   :  { %v2596_v48 = vpack.c.bf16 %v2049_v8, %v2049_v8  ;;  %v2001_v55 = vadd.f32 %v3646_v28, %v1945_v15  ;;  %v2003_v33 = vadd.f32 %v3646_v28, %v1947_v44  ;;  %v1850_v57 = vmax.f32 %v3529_v19, %v1332_v24  ;;  %v4051_v19 = vld [vmem:[#allocation4_spill] sm:$0xff]  ;;  %v4060_v24 = vld [vmem:[#allocation15_spill] sm:$0xff] }
 0x15d   :  { %v2598_v58 = vpack.c.bf16 %v2051_v18, %v2051_v18  ;;  %v1901_v41 = vmax.f32 %v4050_v13, %v1732_v40  ;;  %v2802_v3 = vpop.f32.mrf.mxu0  ;;  %v2902_v4 = vpop.f32.mrf.mxu1  ;;  %v1900_v27 = vmax.f32 %v4051_v19, %v2898_v61 }
 0x15e   :  { %2296 = vst.msk [vmem:[%s3994_s3 + $0x4c] sm:$0xf] %vm2276_vm3, %v2596_v48  ;;  %v2050_v22 = vmax.f32 %v2001_v55, 0.0  ;;  %v2052_v23 = vmax.f32 %v2003_v33, 0.0  ;;  %v1948_v25 = vmax.f32 %v1850_v57, %v1899_v17  ;;  %v1853_v39 = vmax.f32 %v4053_v0, %v2802_v3  ;;  %v4061_v55 = vld [vmem:[#allocation13_spill] sm:$0xff]  ;;  %v4062_v57 = vld [vmem:[#allocation16_spill] sm:$0xff] }
 0x15f   :  { %2298 = vst.msk [vmem:[%s3994_s3 + $0x54] sm:$0xf] %vm2276_vm3, %v2598_v58  ;;  %v1950_v29 = vmax.f32 %v1852_v6, %v1901_v41  ;;  %v1335_v16 = vpop.f32.mrf.mxu0  ;;  %v1735_v30 = vpop.f32.mrf.mxu1  ;;  %v1904_v53 = vmax.f32 %v4059_v2, %v2902_v4 }
 0x160   :  { %v2597_v49 = vpack.c.bf16 %v2050_v22, %v2050_v22  ;;  %v2599_v32 = vpack.c.bf16 %v2052_v23, %v2052_v23  ;;  %v2004_v47 = vadd.f32 %v3646_v28, %v1948_v25  ;;  %v1851_v38 = vmax.f32 %v4052_v50, %v1335_v16  ;;  %v4063_v22 = vld [vmem:[#allocation20_spill] sm:$0xff]  ;;  %v4065_v50 = vld [vmem:[#allocation27_spill] sm:$0xff] }
 0x161   :  { %v2006_v62 = vadd.f32 %v3646_v28, %v1950_v29  ;;  %v1902_v9 = vmax.f32 %v4054_v26, %v1735_v30  ;;  %v2805_v7 = vpop.f32.mrf.mxu0  ;;  %v2905_v42 = vpop.f32.mrf.mxu1 }
 0x162   :  { %2297 = vst.msk [vmem:[%s3994_s3 + $0x50] sm:$0xf] %vm2276_vm3, %v2597_v49  ;;  %2299 = vst.msk [vmem:[%s3994_s3 + $0x58] sm:$0xf] %vm2276_vm3, %v2599_v32  ;;  %v2053_v10 = vmax.f32 %v2004_v47, 0.0  ;;  %v1949_v59 = vmax.f32 %v1851_v38, %v1900_v27  ;;  %v1856_v20 = vmax.f32 %v4056_v51, %v2805_v7  ;;  %v1907_v23 = vmax.f32 %v4063_v22, %v2905_v42  ;;  %v4064_v49 = vld [vmem:[#allocation17_spill] sm:$0xff] }
 0x163   :  { %v2055_v60 = vmax.f32 %v2006_v62, 0.0  ;;  %v1951_v54 = vmax.f32 %v1853_v39, %v1902_v9  ;;  %v1348_v36 = vpop.f32.mrf.mxu0  ;;  %v1748_v61 = vpop.f32.mrf.mxu1  ;;  %v4066_v62 = vld [vmem:[#allocation18_spill] sm:$0xff] }
 0x164   :  { %v2600_v14 = vpack.c.bf16 %v2053_v10, %v2053_v10  ;;  %v2005_v11 = vadd.f32 %v3646_v28, %v1949_v59  ;;  %v1854_v45 = vmax.f32 %v4057_v52, %v1348_v36  ;;  %v1905_v12 = vmax.f32 %v4058_v21, %v1748_v61  ;;  %v4067_v42 = vld [vmem:[#allocation14_spill] sm:$0xff]  ;;  %v4069_v61 = vld [vmem:[#allocation23_spill] sm:$0xff] }
 0x165   :  { %v2602_v46 = vpack.c.bf16 %v2055_v60, %v2055_v60  ;;  %v2007_v35 = vadd.f32 %v3646_v28, %v1951_v54  ;;  %v2806_v56 = vpop.f32.mrf.mxu0  ;;  %v2906_v1 = vpop.f32.mrf.mxu1 }
 0x166   :  { %2300 = vst.msk [vmem:[%s3994_s3 + $0x5c] sm:$0xf] %vm2276_vm3, %v2600_v14  ;;  %v2054_v34 = vmax.f32 %v2005_v11, 0.0  ;;  %v1952_v37 = vmax.f32 %v1854_v45, %v1903_v31  ;;  %v1954_v63 = vmax.f32 %v1856_v20, %v1905_v12  ;;  %v1857_v33 = vmax.f32 %v4061_v55, %v2806_v56  ;;  %v4068_v31 = vld [vmem:[#allocation21_spill] sm:$0xff]  ;;  %v4070_v11 = vld [vmem:[#allocation24_spill] sm:$0xff] }
 0x167   :  { %2302 = vst.msk [vmem:[%s3994_s3 + $0x64] sm:$0xf] %vm2276_vm3, %v2602_v46  ;;  %v2056_v43 = vmax.f32 %v2007_v35, 0.0  ;;  %v1351_v8 = vpop.f32.mrf.mxu0  ;;  %v1751_v15 = vpop.f32.mrf.mxu1  ;;  %v1908_v10 = vmax.f32 %v4067_v42, %v2906_v1 }
 0x168   :  { %v2601_v44 = vpack.c.bf16 %v2054_v34, %v2054_v34  ;;  %v2008_v17 = vadd.f32 %v3646_v28, %v1952_v37  ;;  %v2010_v18 = vadd.f32 %v3646_v28, %v1954_v63  ;;  %v1855_v40 = vmax.f32 %v4060_v24, %v1351_v8  ;;  %v4071_v34 = vld [vmem:[#allocation28_spill] sm:$0xff]  ;;  %v4073_v24 = vld [vmem:[#allocation35_spill] sm:$0xff] }
 0x169   :  { %v2603_v48 = vpack.c.bf16 %v2056_v43, %v2056_v43  ;;  %v1906_v58 = vmax.f32 %v4062_v57, %v1751_v15  ;;  %v2809_v6 = vpop.f32.mrf.mxu0  ;;  %v2909_v13 = vpop.f32.mrf.mxu1 }
 0x16a   :  { %2301 = vst.msk [vmem:[%s3994_s3 + $0x60] sm:$0xf] %vm2276_vm3, %v2601_v44  ;;  %v2057_v41 = vmax.f32 %v2008_v17, 0.0  ;;  %v2059_v3 = vmax.f32 %v2010_v18, 0.0  ;;  %v1953_v4 = vmax.f32 %v1855_v40, %v1904_v53  ;;  %v1860_v38 = vmax.f32 %v4065_v50, %v2809_v6  ;;  %v4072_v44 = vld [vmem:[#allocation25_spill] sm:$0xff] }
 0x16b   :  { %2303 = vst.msk [vmem:[%s3994_s3 + $0x68] sm:$0xf] %vm2276_vm3, %v2603_v48  ;;  %v1955_v25 = vmax.f32 %v1857_v33, %v1906_v58  ;;  %v1364_v19 = vpop.f32.mrf.mxu0  ;;  %v1764_v27 = vpop.f32.mrf.mxu1  ;;  %v1911_v37 = vmax.f32 %v4071_v34, %v2909_v13  ;;  %v4074_v48 = vld [vmem:[#allocation26_spill] sm:$0xff] }
 0x16c   :  { %v2604_v29 = vpack.c.bf16 %v2057_v41, %v2057_v41  ;;  %v2606_v16 = vpack.c.bf16 %v2059_v3, %v2059_v3  ;;  %v2009_v30 = vadd.f32 %v3646_v28, %v1953_v4  ;;  %v1858_v32 = vmax.f32 %v4064_v49, %v1364_v19  ;;  %v4075_v41 = vld [vmem:[#allocation22_spill] sm:$0xff]  ;;  %v4077_v49 = vld [vmem:[#allocation29_spill] sm:$0xff] }
 0x16d   :  { %v2011_v47 = vadd.f32 %v3646_v28, %v1955_v25  ;;  %v1909_v0 = vmax.f32 %v4066_v62, %v1764_v27  ;;  %v2810_v39 = vpop.f32.mrf.mxu0  ;;  %v2910_v26 = vpop.f32.mrf.mxu1 }
 0x16e   :  { %2304 = vst.msk [vmem:[%s3994_s3 + $0x6c] sm:$0xf] %vm2276_vm3, %v2604_v29  ;;  %2306 = vst.msk [vmem:[%s3994_s3 + $0x74] sm:$0xf] %vm2276_vm3, %v2606_v16  ;;  %v2058_v9 = vmax.f32 %v2009_v30, 0.0  ;;  %v1956_v7 = vmax.f32 %v1858_v32, %v1907_v23  ;;  %v1861_v60 = vmax.f32 %v4068_v31, %v2810_v39  ;;  %v1912_v3 = vmax.f32 %v4075_v41, %v2910_v26  ;;  %v4076_v29 = vld [vmem:[#allocation31_spill] sm:$0xff] }
 0x16f   :  { %v2060_v59 = vmax.f32 %v2011_v47, 0.0  ;;  %v1958_v5 = vmax.f32 %v1860_v38, %v1909_v0  ;;  %v1367_v54 = vpop.f32.mrf.mxu0  ;;  %v1767_v51 = vpop.f32.mrf.mxu1  ;;  %v4078_v47 = vld [vmem:[#allocation32_spill] sm:$0xff] }
 0x170   :  { %v2605_v20 = vpack.c.bf16 %v2058_v9, %v2058_v9  ;;  %v2012_v36 = vadd.f32 %v3646_v28, %v1956_v7  ;;  %v1859_v14 = vmax.f32 %v4069_v61, %v1367_v54  ;;  %v1910_v52 = vmax.f32 %v4070_v11, %v1767_v51  ;;  %v4079_v26 = vld [vmem:[#allocation36_spill] sm:$0xff]  ;;  %v4081_v51 = vld [vmem:[#allocation33_spill] sm:$0xff] }
 0x171   :  { %v2607_v45 = vpack.c.bf16 %v2060_v59, %v2060_v59  ;;  %v2014_v21 = vadd.f32 %v3646_v28, %v1958_v5  ;;  %v2813_v12 = vpop.f32.mrf.mxu0  ;;  %v2913_v46 = vpop.f32.mrf.mxu1 }
 0x172   :  { %2305 = vst.msk [vmem:[%s3994_s3 + $0x70] sm:$0xf] %vm2276_vm3, %v2605_v20  ;;  %v2061_v35 = vmax.f32 %v2012_v36, 0.0  ;;  %v1957_v56 = vmax.f32 %v1859_v14, %v1908_v10  ;;  %v1959_v1 = vmax.f32 %v1861_v60, %v1910_v52  ;;  %v1864_v40 = vmax.f32 %v4073_v24, %v2813_v12  ;;  %v4080_v10 = vld [vmem:[#allocation43_spill] sm:$0xff]  ;;  %v4082_v36 = vld [vmem:[#allocation34_spill] sm:$0xff] }
 0x173   :  { %2307 = vst.msk [vmem:[%s3994_s3 + $0x78] sm:$0xf] %vm2276_vm3, %v2607_v45  ;;  %v2063_v63 = vmax.f32 %v2014_v21, 0.0  ;;  %v1380_v2 = vpop.f32.mrf.mxu0  ;;  %v1780_v53 = vpop.f32.mrf.mxu1  ;;  %v1915_v9 = vmax.f32 %v4079_v26, %v2913_v46 }
 0x174   :  { %v2608_v43 = vpack.c.bf16 %v2061_v35, %v2061_v35  ;;  %v2013_v8 = vadd.f32 %v3646_v28, %v1957_v56  ;;  %v2015_v15 = vadd.f32 %v3646_v28, %v1959_v1  ;;  %v1862_v17 = vmax.f32 %v4072_v44, %v1380_v2  ;;  %v4083_v35 = vld [vmem:[#allocation30_spill] sm:$0xff]  ;;  %v4085_v44 = vld [vmem:[#allocation37_spill] sm:$0xff] }
 0x175   :  { %v2610_v18 = vpack.c.bf16 %v2063_v63, %v2063_v63  ;;  %v1913_v55 = vmax.f32 %v4074_v48, %v1780_v53  ;;  %v2814_v33 = vpop.f32.mrf.mxu0  ;;  %v2914_v57 = vpop.f32.mrf.mxu1 }
 0x176   :  { %2308 = vst.msk [vmem:[%s3994_s3 + $0x7c] sm:$0xf] %vm2276_vm3, %v2608_v43  ;;  %v2062_v58 = vmax.f32 %v2013_v8, 0.0  ;;  %v2064_v6 = vmax.f32 %v2015_v15, 0.0  ;;  %v1960_v13 = vmax.f32 %v1862_v17, %v1911_v37  ;;  %v1865_v32 = vmax.f32 %v4077_v49, %v2814_v33  ;;  %v4084_v43 = vld [vmem:[#allocation39_spill] sm:$0xff] }
 0x177   :  { %2310 = vst.msk [vmem:[%s3994_s3 + $0x84] sm:$0xf] %vm2276_vm3, %v2610_v18  ;;  %v1962_v4 = vmax.f32 %v1864_v40, %v1913_v55  ;;  %v1383_v22 = vpop.f32.mrf.mxu0  ;;  %v1783_v23 = vpop.f32.mrf.mxu1  ;;  %v1916_v56 = vmax.f32 %v4083_v35, %v2914_v57  ;;  %v4086_v18 = vld [vmem:[#allocation40_spill] sm:$0xff] }
 0x178   :  { %v2609_v25 = vpack.c.bf16 %v2062_v58, %v2062_v58  ;;  %v2611_v19 = vpack.c.bf16 %v2064_v6, %v2064_v6  ;;  %v2016_v27 = vadd.f32 %v3646_v28, %v1960_v13  ;;  %v1863_v16 = vmax.f32 %v4076_v29, %v1383_v22  ;;  %v4087_v58 = vld [vmem:[#allocation44_spill] sm:$0xff]  ;;  %v4089_v29 = vld [vmem:[#allocation51_spill] sm:$0xff] }
 0x179   :  { %v2018_v30 = vadd.f32 %v3646_v28, %v1962_v4  ;;  %v1914_v50 = vmax.f32 %v4078_v47, %v1783_v23  ;;  %v2817_v38 = vpop.f32.mrf.mxu0  ;;  %v2917_v62 = vpop.f32.mrf.mxu1 }
 0x17a   :  { %2309 = vst.msk [vmem:[%s3994_s3 + $0x80] sm:$0xf] %vm2276_vm3, %v2609_v25  ;;  %2311 = vst.msk [vmem:[%s3994_s3 + $0x88] sm:$0xf] %vm2276_vm3, %v2611_v19  ;;  %v2065_v0 = vmax.f32 %v2016_v27, 0.0  ;;  %v1961_v39 = vmax.f32 %v1863_v16, %v1912_v3  ;;  %v1868_v59 = vmax.f32 %v4080_v10, %v2817_v38  ;;  %v1919_v6 = vmax.f32 %v4087_v58, %v2917_v62  ;;  %v4088_v25 = vld [vmem:[#allocation41_spill] sm:$0xff] }
 0x17b   :  { %v2067_v7 = vmax.f32 %v2018_v30, 0.0  ;;  %v1963_v42 = vmax.f32 %v1865_v32, %v1914_v50  ;;  %v1396_v5 = vpop.f32.mrf.mxu0  ;;  %v1796_v31 = vpop.f32.mrf.mxu1  ;;  %v4090_v30 = vld [vmem:[#allocation42_spill] sm:$0xff]  ;;  %v4102_v58 = vld [vmem:[#allocation55_spill] sm:$0xff] }
 0x17c   :  { %v2612_v60 = vpack.c.bf16 %v2065_v0, %v2065_v0  ;;  %v2017_v54 = vadd.f32 %v3646_v28, %v1961_v39  ;;  %v1866_v20 = vmax.f32 %v4081_v51, %v1396_v5  ;;  %v1917_v61 = vmax.f32 %v4082_v36, %v1796_v31  ;;  %v4091_v62 = vld [vmem:[#allocation38_spill] sm:$0xff]  ;;  %v4093_v31 = vld [vmem:[#allocation47_spill] sm:$0xff] }
 0x17d   :  { %v2614_v14 = vpack.c.bf16 %v2067_v7, %v2067_v7  ;;  %v2019_v11 = vadd.f32 %v3646_v28, %v1963_v42  ;;  %v2818_v52 = vpop.f32.mrf.mxu0  ;;  %v2918_v45 = vpop.f32.mrf.mxu1  ;;  %v4096_v36 = vld [vmem:[#allocation2_spill] sm:$0xff] }
 0x17e   :  { %2312 = vst.msk [vmem:[%s3994_s3 + $0x8c] sm:$0xf] %vm2276_vm3, %v2612_v60  ;;  %v2066_v21 = vmax.f32 %v2017_v54, 0.0  ;;  %v1964_v12 = vmax.f32 %v1866_v20, %v1915_v9  ;;  %v1966_v46 = vmax.f32 %v1868_v59, %v1917_v61  ;;  %v1869_v17 = vmax.f32 %v4085_v44, %v2818_v52  ;;  %v4092_v9 = vld [vmem:[#allocation45_spill] sm:$0xff]  ;;  %v4094_v54 = vld [vmem:[#allocation48_spill] sm:$0xff] }
 0x17f   :  { %2314 = vst.msk [vmem:[%s3994_s3 + $0x94] sm:$0xf] %vm2276_vm3, %v2614_v14  ;;  %v2068_v1 = vmax.f32 %v2019_v11, 0.0  ;;  %v1399_v34 = vpop.f32.mrf.mxu0  ;;  %v1799_v37 = vpop.f32.mrf.mxu1  ;;  %v1920_v0 = vmax.f32 %v4091_v62, %v2918_v45  ;;  %v4095_v20 = vld [vmem:[#allocation56_spill] sm:$0xff] }
 0x180   :  { %v2613_v63 = vpack.c.bf16 %v2066_v21, %v2066_v21  ;;  %v2020_v2 = vadd.f32 %v3646_v28, %v1964_v12  ;;  %v2022_v53 = vadd.f32 %v3646_v28, %v1966_v46  ;;  %v1867_v8 = vmax.f32 %v4084_v43, %v1399_v34  ;;  %v4097_v46 = vld [vmem:[#allocation50_spill] sm:$0xff]  ;;  %v4099_v43 = vld [vmem:[#allocation3_spill] sm:$0xff] }
 0x181   :  { %v2615_v15 = vpack.c.bf16 %v2068_v1, %v2068_v1  ;;  %v1918_v24 = vmax.f32 %v4086_v18, %v1799_v37  ;;  %v2821_v40 = vpop.f32.mrf.mxu0  ;;  %v2921_v48 = vpop.f32.mrf.mxu1  ;;  %v1827_v61 = vmax.f32 %v4096_v36, %v4095_v20  ;;  %v4101_v18 = vld [vmem:[#allocation49_spill] sm:$0xff] }
 0x182   :  { %2313 = vst.msk [vmem:[%s3994_s3 + $0x90] sm:$0xf] %vm2276_vm3, %v2613_v63  ;;  %v2069_v55 = vmax.f32 %v2020_v2, 0.0  ;;  %v2071_v33 = vmax.f32 %v2022_v53, 0.0  ;;  %v1965_v57 = vmax.f32 %v1867_v8, %v1916_v56  ;;  %v1872_v16 = vmax.f32 %v4089_v29, %v2821_v40  ;;  %v4098_v53 = vld [vmem:[#allocation53_spill] sm:$0xff] }
 0x183   :  { %2315 = vst.msk [vmem:[%s3994_s3 + $0x98] sm:$0xf] %vm2276_vm3, %v2615_v15  ;;  %v1967_v13 = vmax.f32 %v1869_v17, %v1918_v24  ;;  %v1412_v41 = vpop.f32.mrf.mxu0  ;;  %v1812_v3 = vpop.f32.mrf.mxu1  ;;  %v1828_v8 = vmax.f32 %v4099_v43, %v4098_v53  ;;  %v4100_v15 = vld [vmem:[#allocation52_spill] sm:$0xff] }
 0x184   :  { %v2616_v4 = vpack.c.bf16 %v2069_v55, %v2069_v55  ;;  %v2618_v22 = vpack.c.bf16 %v2071_v33, %v2071_v33  ;;  %v2021_v23 = vadd.f32 %v3646_v28, %v1965_v57  ;;  %v1870_v19 = vmax.f32 %v4088_v25, %v1412_v41 }
 0x185   :  { %v2023_v27 = vadd.f32 %v3646_v28, %v1967_v13  ;;  %v1921_v49 = vmax.f32 %v4090_v30, %v1812_v3  ;;  %v2822_v32 = vpop.f32.mrf.mxu0  ;;  %v2922_v47 = vpop.f32.mrf.mxu1  ;;  %v1923_v44 = vmax.f32 %v4100_v15, %v2921_v48 }
 0x186   :  { %2316 = vst.msk [vmem:[%s3994_s3 + $0x9c] sm:$0xf] %vm2276_vm3, %v2616_v4  ;;  %2318 = vst.msk [vmem:[%s3994_s3 + $0xa4] sm:$0xf] %vm2276_vm3, %v2618_v22  ;;  %v2070_v50 = vmax.f32 %v2021_v23, 0.0  ;;  %v1968_v38 = vmax.f32 %v1870_v19, %v1919_v6  ;;  %v1873_v7 = vmax.f32 %v4092_v9, %v2822_v32  ;;  %v4103_v23 = vld [vmem:[#allocation46_spill] sm:$0xff] }
 0x187   :  { %v2072_v39 = vmax.f32 %v2023_v27, 0.0  ;;  %v1970_v26 = vmax.f32 %v1872_v16, %v1921_v49  ;;  %v1415_v42 = vpop.f32.mrf.mxu0  ;;  %v1815_v10 = vpop.f32.mrf.mxu1  ;;  %v1924_v25 = vmax.f32 %v4103_v23, %v2922_v47  ;;  %v4104_v27 = vld [vmem:[#allocation54_spill] sm:$0xff] }
 0x188   :  { %v2617_v59 = vpack.c.bf16 %v2070_v50, %v2070_v50  ;;  %v2024_v5 = vadd.f32 %v3646_v28, %v1968_v38  ;;  %v1871_v60 = vmax.f32 %v4093_v31, %v1415_v42  ;;  %v1922_v51 = vmax.f32 %v4094_v54, %v1815_v10 }
 0x189   :  { %v2619_v14 = vpack.c.bf16 %v2072_v39, %v2072_v39  ;;  %v2026_v11 = vadd.f32 %v3646_v28, %v1970_v26  ;;  %v2825_v52 = vpop.f32.mrf.mxu0 }
 0x18a   :  { %2317 = vst.msk [vmem:[%s3994_s3 + $0xa0] sm:$0xf] %vm2276_vm3, %v2617_v59  ;;  %v2073_v45 = vmax.f32 %v2024_v5, 0.0  ;;  %v1969_v21 = vmax.f32 %v1871_v60, %v1920_v0  ;;  %v1971_v12 = vmax.f32 %v1873_v7, %v1922_v51  ;;  %v1876_v35 = vmax.f32 %v2825_v52, %v4097_v46 }
 0x18b   :  { %2319 = vst.msk [vmem:[%s3994_s3 + $0xa8] sm:$0xf] %vm2276_vm3, %v2619_v14  ;;  %v2075_v56 = vmax.f32 %v2026_v11, 0.0  ;;  %v1428_v1 = vpop.f32.mrf.mxu0 }
 0x18c   :  { %v2620_v34 = vpack.c.bf16 %v2073_v45, %v2073_v45  ;;  %v2025_v37 = vadd.f32 %v3646_v28, %v1969_v21  ;;  %v2027_v63 = vadd.f32 %v3646_v28, %v1971_v12  ;;  %v1925_v2 = vmax.f32 %v1827_v61, %v1876_v35 }
 0x18d   :  { %v2622_v17 = vpack.c.bf16 %v2075_v56, %v2075_v56  ;;  %v1874_v24 = vmax.f32 %v4101_v18, %v1428_v1  ;;  %v2826_v40 = vpop.f32.mrf.mxu0 }
 0x18e   :  { %2320 = vst.msk [vmem:[%s3994_s3 + $0xac] sm:$0xf] %vm2276_vm3, %v2620_v34  ;;  %v2074_v55 = vmax.f32 %v2025_v37, 0.0  ;;  %v2076_v33 = vmax.f32 %v2027_v63, 0.0  ;;  %v1981_v57 = vadd.f32 %v3646_v28, %v1925_v2  ;;  %v1877_v6 = vmax.f32 %v2826_v40, %v4102_v58 }
 0x18f   :  { %2322 = vst.msk [vmem:[%s3994_s3 + $0xb4] sm:$0xf] %vm2276_vm3, %v2622_v17  ;;  %v1972_v48 = vmax.f32 %v1874_v24, %v1923_v44  ;;  %v1431_v13 = vpop.f32.mrf.mxu0 }
 0x190   :  { %v2621_v41 = vpack.c.bf16 %v2074_v55, %v2074_v55  ;;  %v2623_v3 = vpack.c.bf16 %v2076_v33, %v2076_v33  ;;  %v2030_v4 = vmax.f32 %v1981_v57, 0.0  ;;  %v1926_v22 = vmax.f32 %v1828_v8, %v1877_v6 }
 0x191   :  { %v2028_v19 = vadd.f32 %v3646_v28, %v1972_v48  ;;  %v1875_v29 = vmax.f32 %v4104_v27, %v1431_v13 }
 0x192   :  { %2321 = vst.msk [vmem:[%s3994_s3 + $0xb0] sm:$0xf] %vm2276_vm3, %v2621_v41  ;;  %2323 = vst.msk [vmem:[%s3994_s3 + $0xb8] sm:$0xf] %vm2276_vm3, %v2623_v3  ;;  %v2577_v16 = vpack.c.bf16 %v2030_v4, %v2030_v4  ;;  %v1982_v30 = vadd.f32 %v3646_v28, %v1926_v22 }
 0x193   :  { %v2077_v49 = vmax.f32 %v2028_v19, 0.0  ;;  %v1973_v32 = vmax.f32 %v1875_v29, %v1924_v25 }
 0x194   :  { %2277 = vst.msk [vmem:[%s3994_s3] sm:$0xf] %vm2276_vm3, %v2577_v16  ;;  %v2031_v47 = vmax.f32 %v1982_v30, 0.0 }
 0x195   :  { %v2624_v50 = vpack.c.bf16 %v2077_v49, %v2077_v49  ;;  %v2029_v38 = vadd.f32 %v3646_v28, %v1973_v32 }
 0x196   :  { %v2578_v62 = vpack.c.bf16 %v2031_v47, %v2031_v47 }
 0x197   :  { %2324 = vst.msk [vmem:[%s3994_s3 + $0xbc] sm:$0xf] %vm2276_vm3, %v2624_v50  ;;  %v2078_v0 = vmax.f32 %v2029_v38, 0.0 }
 0x198   :  { %2278 = vst.msk [vmem:[%s3994_s3 + $0x4] sm:$0xf] %vm2276_vm3, %v2578_v62 }
 0x199   :  { %v2625_v39 = vpack.c.bf16 %v2078_v0, %v2078_v0 }
 0x19b   :  { %2325 = vst.msk [vmem:[%s3994_s3 + $0xc0] sm:$0xf] %vm2276_vm3, %v2625_v39 }

// kernel: net_forward.4
= control target key start
LH: loop header
LB: loop body
LE: loop exit
PB: predicated region body
PF: predicated region fallthrough
CT: control target
= control target key end

     0   :  { %v1160_v0 = vmov 0   ;;  %vm373_vm0 = vcmask 130048   ;;  %vm870_vm1 = vcmask 257024   ;;  %s1532_s1 = inlined_call_operand.vmem [shape: bf16[144,32], index: 1, kind: input, shape index: {}]   ;;  %s1533_s0 = inlined_call_operand.vmem [shape: bf16[4,104,144], index: 0, kind: input, shape index: {}]   ;;  %s1534_s2 = inlined_call_operand.vmem [shape: f32[1,32], index: 2, kind: input, shape index: {}]   ;;  %s1535_s3 = inlined_call_operand.vmem [shape: bf16[104,32], index: 3, kind: output, shape index: {}]  }
   0x1   :  { %452 = vmatprep.subr.bf16.mxu0 %v1160_v0  ;;  %1002 = vmatprep.subr.bf16.mxu1 %v1160_v0  ;;  %v1021_v1 = vld [vmem:[%s1532_s1 + $0x38] sm:$0xff]   ;;  %v1022_v2 = vld [vmem:[%s1532_s1 + $0x30] sm:$0xff]   ;;  %v1023_v3 = vld [vmem:[%s1532_s1 + $0x28] sm:$0xff]  }
   0x2   :  { %453 = vmatpush1.bf16.msra.mxu0 %v1021_v1  ;;  %1011 = vmatpush1.bf16.msra.mxu1 %v1021_v1  ;;  %v1024_v4 = vld [vmem:[%s1532_s1 + $0x20] sm:$0xff]   ;;  %v1035_v6 = vld [vmem:[%s1533_s0 + $0xd4] ss:$8 sps:$4 sm:$0xff]   ;;  %v1027_v9 = vld [vmem:[%s1532_s1 + $0x8] sm:$0xff]  }
   0x3   :  { %454 = vmatprep.subr.bf16.mxu0 %v1160_v0  ;;  %1003 = vmatprep.subr.bf16.mxu1 %v1160_v0  ;;  %v1032_v5 = vld [vmem:[%s1533_s0 + $0x4] ss:$8 sps:$4 sm:$0xff]   ;;  %v1025_v7 = vld [vmem:[%s1532_s1 + $0x18] sm:$0xff]   ;;  %v1026_v8 = vld [vmem:[%s1532_s1 + $0x10] sm:$0xff]  }
   0x4   :  { %949 = vmatprep.mubr.msk.bf16.mxu0 %vm373_vm0, %v1032_v5  ;;  %962 = vmatprep.mubr.msk.bf16.mxu1 %vm373_vm0, %v1035_v6  ;;  %v1028_v10 = vld [vmem:[%s1532_s1] sm:$0xff]   ;;  %v1033_v13 = vld [vmem:[%s1533_s0 + $0xd0] ss:$8 sps:$4 sm:$0xff]   ;;  %v1036_v14 = vld [vmem:[%s1533_s0 + $0x14] ss:$8 sps:$4 sm:$0xff]  }
   0x5   :  { %v1029_v11 = vld [vmem:[%s1532_s1 + $0x40] sm:$0xff]   ;;  %v1040_v16 = vld [vmem:[%s1533_s0 + $0x10] ss:$8 sps:$4 sm:$0xff]   ;;  %v1044_v19 = vld [vmem:[%s1533_s0 + $0xf4] ss:$8 sps:$4 sm:$0xff]  }
   0x6   :  { %455 = vmatpush1.bf16.msra.mxu0 %v1022_v2  ;;  %1012 = vmatpush1.bf16.msra.mxu1 %v1022_v2  ;;  %v1030_v12 = vld [vmem:[%s1533_s0] ss:$8 sps:$4 sm:$0xff]   ;;  %v1038_v15 = vld [vmem:[%s1533_s0 + $0xe4] ss:$8 sps:$4 sm:$0xff]   ;;  %v1047_v21 = vld [vmem:[%s1533_s0 + $0xf0] ss:$8 sps:$4 sm:$0xff]  }
   0x7   :  { %456 = vmatprep.subr.bf16.mxu0 %v1160_v0  ;;  %1004 = vmatprep.subr.bf16.mxu1 %v1160_v0  ;;  %v1041_v17 = vld [vmem:[%s1533_s0 + $0xe0] ss:$8 sps:$4 sm:$0xff]   ;;  %v1042_v18 = vld [vmem:[%s1533_s0 + $0x24] ss:$8 sps:$4 sm:$0xff]   ;;  %v1048_v22 = vld [vmem:[%s1533_s0 + $0x34] ss:$8 sps:$4 sm:$0xff]  }
   0x8   :  { %v1046_v20 = vld [vmem:[%s1533_s0 + $0x20] ss:$8 sps:$4 sm:$0xff]   ;;  %v1050_v23 = vld [vmem:[%s1533_s0 + $0x104] ss:$8 sps:$4 sm:$0xff]   ;;  %v1052_v24 = vld [vmem:[%s1533_s0 + $0x30] ss:$8 sps:$4 sm:$0xff]  }
   0x9   :  { %v1053_v25 = vld [vmem:[%s1533_s0 + $0x100] ss:$8 sps:$4 sm:$0xff]   ;;  %v1054_v26 = vld [vmem:[%s1533_s0 + $0x44] ss:$8 sps:$4 sm:$0xff]   ;;  %v1056_v27 = vld [vmem:[%s1533_s0 + $0x114] ss:$8 sps:$4 sm:$0xff]  }
   0xa   :  { %457 = vmatpush1.bf16.msra.mxu0 %v1023_v3  ;;  %1013 = vmatpush1.bf16.msra.mxu1 %v1023_v3  ;;  %v1058_v28 = vld [vmem:[%s1533_s0 + $0x40] ss:$8 sps:$4 sm:$0xff]   ;;  %v1059_v29 = vld [vmem:[%s1533_s0 + $0x110] ss:$8 sps:$4 sm:$0xff]   ;;  %v1060_v30 = vld [vmem:[%s1533_s0 + $0x54] ss:$8 sps:$4 sm:$0xff]  }
   0xb   :  { %458 = vmatprep.subr.bf16.mxu0 %v1160_v0  ;;  %1005 = vmatprep.subr.bf16.mxu1 %v1160_v0  ;;  %v1062_v31 = vld [vmem:[%s1533_s0 + $0x124] ss:$8 sps:$4 sm:$0xff]   ;;  %v1064_v32 = vld [vmem:[%s1533_s0 + $0x50] ss:$8 sps:$4 sm:$0xff]   ;;  %v1065_v33 = vld [vmem:[%s1533_s0 + $0x120] ss:$8 sps:$4 sm:$0xff]  }
   0xc   :  { %v1066_v34 = vld [vmem:[%s1533_s0 + $0x64] ss:$8 sps:$4 sm:$0xff]   ;;  %v1068_v35 = vld [vmem:[%s1533_s0 + $0x134] ss:$8 sps:$4 sm:$0xff]   ;;  %v1070_v36 = vld [vmem:[%s1533_s0 + $0x60] ss:$8 sps:$4 sm:$0xff]  }
   0xd   :  { %v1071_v37 = vld [vmem:[%s1533_s0 + $0x130] ss:$8 sps:$4 sm:$0xff]   ;;  %v1072_v38 = vld [vmem:[%s1533_s0 + $0x74] ss:$8 sps:$4 sm:$0xff]   ;;  %v1074_v39 = vld [vmem:[%s1533_s0 + $0x144] ss:$8 sps:$4 sm:$0xff]  }
   0xe   :  { %459 = vmatpush1.bf16.msra.mxu0 %v1024_v4  ;;  %1014 = vmatpush1.bf16.msra.mxu1 %v1024_v4  ;;  %v1076_v40 = vld [vmem:[%s1533_s0 + $0x70] ss:$8 sps:$4 sm:$0xff]   ;;  %v1077_v41 = vld [vmem:[%s1533_s0 + $0x140] ss:$8 sps:$4 sm:$0xff]   ;;  %v1078_v42 = vld [vmem:[%s1533_s0 + $0x84] ss:$8 sps:$4 sm:$0xff]  }
   0xf   :  { %460 = vmatprep.subr.bf16.mxu0 %v1160_v0  ;;  %1006 = vmatprep.subr.bf16.mxu1 %v1160_v0  ;;  %v1080_v43 = vld [vmem:[%s1533_s0 + $0x154] ss:$8 sps:$4 sm:$0xff]   ;;  %v1082_v44 = vld [vmem:[%s1533_s0 + $0x80] ss:$8 sps:$4 sm:$0xff]   ;;  %v1083_v45 = vld [vmem:[%s1533_s0 + $0x150] ss:$8 sps:$4 sm:$0xff]  }
  0x10   :  { %v1084_v46 = vld [vmem:[%s1533_s0 + $0x94] ss:$8 sps:$4 sm:$0xff]   ;;  %v1086_v47 = vld [vmem:[%s1533_s0 + $0x164] ss:$8 sps:$4 sm:$0xff]   ;;  %v1088_v48 = vld [vmem:[%s1533_s0 + $0x90] ss:$8 sps:$4 sm:$0xff]  }
  0x11   :  { %v1089_v49 = vld [vmem:[%s1533_s0 + $0x160] ss:$8 sps:$4 sm:$0xff]   ;;  %v1090_v50 = vld [vmem:[%s1533_s0 + $0xa4] ss:$8 sps:$4 sm:$0xff]   ;;  %v1092_v51 = vld [vmem:[%s1533_s0 + $0x174] ss:$8 sps:$4 sm:$0xff]  }
  0x12   :  { %461 = vmatpush1.bf16.msra.mxu0 %v1025_v7  ;;  %1015 = vmatpush1.bf16.msra.mxu1 %v1025_v7  ;;  %v1094_v52 = vld [vmem:[%s1533_s0 + $0xa0] ss:$8 sps:$4 sm:$0xff]   ;;  %v1095_v53 = vld [vmem:[%s1533_s0 + $0x170] ss:$8 sps:$4 sm:$0xff]   ;;  %v1096_v54 = vld [vmem:[%s1533_s0 + $0xb4] ss:$8 sps:$4 sm:$0xff]  }
  0x13   :  { %462 = vmatprep.subr.bf16.mxu0 %v1160_v0  ;;  %1007 = vmatprep.subr.bf16.mxu1 %v1160_v0  ;;  %v1098_v55 = vld [vmem:[%s1533_s0 + $0x184] ss:$8 sps:$4 sm:$0xff]   ;;  %v1100_v56 = vld [vmem:[%s1533_s0 + $0xb0] ss:$8 sps:$4 sm:$0xff]   ;;  %v1101_v57 = vld [vmem:[%s1533_s0 + $0x180] ss:$8 sps:$4 sm:$0xff]  }
  0x14   :  { %v1102_v58 = vld [vmem:[%s1533_s0 + $0xc4] ss:$8 sps:$4 sm:$0xff]   ;;  %v1104_v59 = vld [vmem:[%s1533_s0 + $0x194] ss:$8 sps:$4 sm:$0xff]   ;;  %v1106_v60 = vld [vmem:[%s1533_s0 + $0xc0] ss:$8 sps:$4 sm:$0xff]  }
  0x15   :  { %v1107_v61 = vld [vmem:[%s1533_s0 + $0x190] ss:$8 sps:$4 sm:$0xff]  }
  0x16   :  { %463 = vmatpush1.bf16.msra.mxu0 %v1026_v8  ;;  %1016 = vmatpush1.bf16.msra.mxu1 %v1026_v8 }
  0x17   :  { %464 = vmatprep.subr.bf16.mxu0 %v1160_v0  ;;  %1008 = vmatprep.subr.bf16.mxu1 %v1160_v0 }
  0x1a   :  { %465 = vmatpush1.bf16.msra.mxu0 %v1027_v9  ;;  %1017 = vmatpush1.bf16.msra.mxu1 %v1027_v9 }
  0x1b   :  { %466 = vmatprep.subr.bf16.mxu0 %v1160_v0  ;;  %1009 = vmatprep.subr.bf16.mxu1 %v1160_v0 }
  0x1e   :  { %467 = vmatpush1.bf16.msra.mxu0 %v1028_v10  ;;  %1018 = vmatpush1.bf16.msra.mxu1 %v1028_v10 }
  0x1f   :  { %482 = vmatprep.subr.bf16.mxu0 %v1160_v0  ;;  %1010 = vmatprep.subr.bf16.mxu1 %v1160_v0 }
  0x22   :  { %483 = vmatpush2.bf16.msra.mxu0 %v1029_v11  ;;  %1019 = vmatpush2.bf16.msra.mxu1 %v1029_v11 }
  0x25   :  { %485 = vmatmul.mubr.bf16.vlgmr.msra.gmra.mxu0 %v1030_v12  ;;  %589 = vmatmul.mubr.bf16.vlgmr.msra.gmra.mxu1 %v1033_v13 }
  0x26   :  { %950 = vmatprep.mubr.msk.bf16.mxu0 %vm373_vm0, %v1036_v14  ;;  %963 = vmatprep.mubr.msk.bf16.mxu1 %vm373_vm0, %v1038_v15 }
  0x2d   :  { %493 = vmatmul.mubr.bf16.gmra.mxu0 %v1040_v16  ;;  %597 = vmatmul.mubr.bf16.gmra.mxu1 %v1041_v17 }
  0x2e   :  { %951 = vmatprep.mubr.msk.bf16.mxu0 %vm373_vm0, %v1042_v18  ;;  %964 = vmatprep.mubr.msk.bf16.mxu1 %vm373_vm0, %v1044_v19 }
  0x35   :  { %501 = vmatmul.mubr.bf16.gmra.mxu0 %v1046_v20  ;;  %605 = vmatmul.mubr.bf16.gmra.mxu1 %v1047_v21 }
  0x36   :  { %952 = vmatprep.mubr.msk.bf16.mxu0 %vm373_vm0, %v1048_v22  ;;  %965 = vmatprep.mubr.msk.bf16.mxu1 %vm373_vm0, %v1050_v23 }
  0x3d   :  { %509 = vmatmul.mubr.bf16.gmra.mxu0 %v1052_v24  ;;  %613 = vmatmul.mubr.bf16.gmra.mxu1 %v1053_v25 }
  0x3e   :  { %953 = vmatprep.mubr.msk.bf16.mxu0 %vm373_vm0, %v1054_v26  ;;  %966 = vmatprep.mubr.msk.bf16.mxu1 %vm373_vm0, %v1056_v27 }
  0x45   :  { %517 = vmatmul.mubr.bf16.gmra.mxu0 %v1058_v28  ;;  %621 = vmatmul.mubr.bf16.gmra.mxu1 %v1059_v29 }
  0x46   :  { %954 = vmatprep.mubr.msk.bf16.mxu0 %vm373_vm0, %v1060_v30  ;;  %967 = vmatprep.mubr.msk.bf16.mxu1 %vm373_vm0, %v1062_v31 }
  0x4d   :  { %525 = vmatmul.mubr.bf16.gmra.mxu0 %v1064_v32  ;;  %629 = vmatmul.mubr.bf16.gmra.mxu1 %v1065_v33 }
  0x4e   :  { %955 = vmatprep.mubr.msk.bf16.mxu0 %vm373_vm0, %v1066_v34  ;;  %968 = vmatprep.mubr.msk.bf16.mxu1 %vm373_vm0, %v1068_v35 }
  0x55   :  { %533 = vmatmul.mubr.bf16.gmra.mxu0 %v1070_v36  ;;  %637 = vmatmul.mubr.bf16.gmra.mxu1 %v1071_v37 }
  0x56   :  { %956 = vmatprep.mubr.msk.bf16.mxu0 %vm373_vm0, %v1072_v38  ;;  %969 = vmatprep.mubr.msk.bf16.mxu1 %vm373_vm0, %v1074_v39 }
  0x5d   :  { %541 = vmatmul.mubr.bf16.gmra.mxu0 %v1076_v40  ;;  %645 = vmatmul.mubr.bf16.gmra.mxu1 %v1077_v41 }
  0x5e   :  { %957 = vmatprep.mubr.msk.bf16.mxu0 %vm373_vm0, %v1078_v42  ;;  %970 = vmatprep.mubr.msk.bf16.mxu1 %vm373_vm0, %v1080_v43 }
  0x65   :  { %549 = vmatmul.mubr.bf16.gmra.mxu0 %v1082_v44  ;;  %653 = vmatmul.mubr.bf16.gmra.mxu1 %v1083_v45 }
  0x66   :  { %958 = vmatprep.mubr.msk.bf16.mxu0 %vm373_vm0, %v1084_v46  ;;  %971 = vmatprep.mubr.msk.bf16.mxu1 %vm373_vm0, %v1086_v47 }
  0x6d   :  { %557 = vmatmul.mubr.bf16.gmra.mxu0 %v1088_v48  ;;  %661 = vmatmul.mubr.bf16.gmra.mxu1 %v1089_v49 }
  0x6e   :  { %959 = vmatprep.mubr.msk.bf16.mxu0 %vm373_vm0, %v1090_v50  ;;  %972 = vmatprep.mubr.msk.bf16.mxu1 %vm373_vm0, %v1092_v51 }
  0x75   :  { %565 = vmatmul.mubr.bf16.gmra.mxu0 %v1094_v52  ;;  %669 = vmatmul.mubr.bf16.gmra.mxu1 %v1095_v53 }
  0x76   :  { %960 = vmatprep.mubr.msk.bf16.mxu0 %vm373_vm0, %v1096_v54  ;;  %973 = vmatprep.mubr.msk.bf16.mxu1 %vm373_vm0, %v1098_v55  ;;  %v1441_v54 = vld [vmem:[%s1534_s2] ss:$0 sm:$0xff] }
  0x7d   :  { %573 = vmatmul.mubr.bf16.gmra.mxu0 %v1100_v56  ;;  %677 = vmatmul.mubr.bf16.gmra.mxu1 %v1101_v57 }
  0x7e   :  { %961 = vmatprep.mubr.msk.bf16.mxu0 %vm373_vm0, %v1102_v58  ;;  %974 = vmatprep.mubr.msk.bf16.mxu1 %vm373_vm0, %v1104_v59 }
  0x85   :  { %581 = vmatmul.mubr.bf16.gmra.mxu0 %v1106_v60  ;;  %685 = vmatmul.mubr.bf16.gmra.mxu1 %v1107_v61 }
  0xe5   :  { %v486_v62 = vpop.f32.mrf.mxu0  ;;  %v590_v63 = vpop.f32.mrf.mxu1 }
  0xe7   :  { %v488_v0 = vpop.f32.mrf.mxu0  ;;  %v592_v1 = vpop.f32.mrf.mxu1 }
  0xe9   :  { %v1390_v2 = vpop.f32.mrf.mxu0  ;;  %v1392_v3 = vpop.f32.mrf.mxu1 }
  0xeb   :  { %v491_v4 = vpop.f32.mrf.mxu0  ;;  %v595_v5 = vpop.f32.mrf.mxu1 }
  0xed   :  { %v1394_v6 = vpop.f32.mrf.mxu0  ;;  %v1396_v7 = vpop.f32.mrf.mxu1 }
  0xef   :  { %v496_v8 = vpop.f32.mrf.mxu0  ;;  %v600_v9 = vpop.f32.mrf.mxu1 }
  0xf1   :  { %v1398_v10 = vpop.f32.mrf.mxu0  ;;  %v1400_v11 = vpop.f32.mrf.mxu1 }
  0xf3   :  { %v499_v12 = vpop.f32.mrf.mxu0  ;;  %v603_v13 = vpop.f32.mrf.mxu1 }
  0xf5   :  { %v1402_v14 = vpop.f32.mrf.mxu0  ;;  %v1404_v15 = vpop.f32.mrf.mxu1 }
  0xf7   :  { %v504_v16 = vpop.f32.mrf.mxu0  ;;  %v608_v17 = vpop.f32.mrf.mxu1 }
  0xf9   :  { %v1406_v18 = vpop.f32.mrf.mxu0  ;;  %v1408_v19 = vpop.f32.mrf.mxu1 }
  0xfb   :  { %v507_v20 = vpop.f32.mrf.mxu0  ;;  %v611_v21 = vpop.f32.mrf.mxu1 }
  0xfd   :  { %v1410_v22 = vpop.f32.mrf.mxu0  ;;  %v1412_v23 = vpop.f32.mrf.mxu1 }
  0xff   :  { %v512_v24 = vpop.f32.mrf.mxu0  ;;  %v616_v25 = vpop.f32.mrf.mxu1 }
 0x101   :  { %v1414_v26 = vpop.f32.mrf.mxu0  ;;  %v1416_v27 = vpop.f32.mrf.mxu1 }
 0x103   :  { %v515_v28 = vpop.f32.mrf.mxu0  ;;  %v619_v29 = vpop.f32.mrf.mxu1 }
 0x105   :  { %v1418_v30 = vpop.f32.mrf.mxu0  ;;  %v1420_v31 = vpop.f32.mrf.mxu1 }
 0x107   :  { %v520_v32 = vpop.f32.mrf.mxu0  ;;  %v624_v33 = vpop.f32.mrf.mxu1 }
 0x109   :  { %v1422_v34 = vpop.f32.mrf.mxu0  ;;  %v1424_v35 = vpop.f32.mrf.mxu1 }
 0x10b   :  { %v523_v36 = vpop.f32.mrf.mxu0  ;;  %v627_v37 = vpop.f32.mrf.mxu1 }
 0x10d   :  { %v1426_v38 = vpop.f32.mrf.mxu0  ;;  %v1428_v39 = vpop.f32.mrf.mxu1 }
 0x10f   :  { %v528_v40 = vpop.f32.mrf.mxu0  ;;  %v632_v41 = vpop.f32.mrf.mxu1 }
 0x111   :  { %v1430_v42 = vpop.f32.mrf.mxu0  ;;  %v1432_v43 = vpop.f32.mrf.mxu1 }
 0x113   :  { %v531_v44 = vpop.f32.mrf.mxu0  ;;  %v635_v45 = vpop.f32.mrf.mxu1 }
 0x115   :  { %v1434_v46 = vpop.f32.mrf.mxu0  ;;  %v1436_v47 = vpop.f32.mrf.mxu1 }
 0x117   :  { %v536_v48 = vpop.f32.mrf.mxu0  ;;  %v640_v49 = vpop.f32.mrf.mxu1 }
 0x119   :  { %v537_v50 = vpop.f32.mrf.mxu0  ;;  %v641_v51 = vpop.f32.mrf.mxu1 }
 0x11a   :  { %v693_v52 = vmax.f32 %v486_v62, %v537_v50  ;;  %v706_v53 = vmax.f32 %v590_v63, %v641_v51 }
 0x11b   :  { %v539_v55 = vpop.f32.mrf.mxu0  ;;  %v643_v56 = vpop.f32.mrf.mxu1 }
 0x11c   :  { %v719_v57 = vmax.f32 %v693_v52, %v706_v53 }
 0x11d   :  { %v542_v58 = vpop.f32.mrf.mxu0  ;;  %v646_v59 = vpop.f32.mrf.mxu1 }
 0x11e   :  { %v739_v60 = vadd.f32 %v1441_v54, %v719_v57  ;;  %v694_v61 = vmax.f32 %v1390_v2, %v542_v58  ;;  %v707_v0 = vmax.f32 %v1392_v3, %v646_v59 }
 0x11f   :  { %v544_v1 = vpop.f32.mrf.mxu0  ;;  %v648_v4 = vpop.f32.mrf.mxu1 }
 0x120   :  { %v752_v62 = vsub.f32 0.0, %v739_v60  ;;  %v720_v63 = vmax.f32 %v694_v61, %v707_v0 }
 0x121   :  { %v545_v5 = vpop.f32.mrf.mxu0  ;;  %v649_v8 = vpop.f32.mrf.mxu1 }
 0x122   :  { %v765_v9 = vmul.f32 1.442695, %v752_v62  ;;  %v740_v12 = vadd.f32 %v1441_v54, %v720_v63  ;;  %v695_v13 = vmax.f32 %v1394_v6, %v545_v5  ;;  %v708_v16 = vmax.f32 %v1396_v7, %v649_v8 }
 0x123   :  { %v547_v17 = vpop.f32.mrf.mxu0  ;;  %v651_v20 = vpop.f32.mrf.mxu1 }
 0x124   :  { %1108 = vpow2.f32 %v765_v9  ;;  %v753_v21 = vsub.f32 0.0, %v740_v12  ;;  %v721_v2 = vmax.f32 %v695_v13, %v708_v16 }
 0x125   :  { %v550_v24 = vpop.f32.mrf.mxu0  ;;  %v654_v3 = vpop.f32.mrf.mxu1 }
 0x126   :  { %v767_v25 = vmul.f32 1.442695, %v753_v21  ;;  %v741_v28 = vadd.f32 %v1441_v54, %v721_v2  ;;  %v696_v29 = vmax.f32 %v1398_v10, %v550_v24  ;;  %v709_v32 = vmax.f32 %v1400_v11, %v654_v3 }
 0x127   :  { %v552_v33 = vpop.f32.mrf.mxu0  ;;  %v656_v36 = vpop.f32.mrf.mxu1 }
 0x128   :  { %1110 = vpow2.f32 %v767_v25  ;;  %v754_v6 = vsub.f32 0.0, %v741_v28  ;;  %v722_v37 = vmax.f32 %v696_v29, %v709_v32 }
 0x129   :  { %v553_v7 = vpop.f32.mrf.mxu0  ;;  %v657_v40 = vpop.f32.mrf.mxu1 }
 0x12a   :  { %v769_v41 = vmul.f32 1.442695, %v754_v6  ;;  %v742_v44 = vadd.f32 %v1441_v54, %v722_v37  ;;  %v697_v45 = vmax.f32 %v1402_v14, %v553_v7  ;;  %v710_v48 = vmax.f32 %v1404_v15, %v657_v40 }
 0x12b   :  { %v555_v49 = vpop.f32.mrf.mxu0  ;;  %v659_v50 = vpop.f32.mrf.mxu1 }
 0x12c   :  { %1112 = vpow2.f32 %v769_v41  ;;  %v755_v10 = vsub.f32 0.0, %v742_v44  ;;  %v723_v51 = vmax.f32 %v697_v45, %v710_v48 }
 0x12d   :  { %v558_v11 = vpop.f32.mrf.mxu0  ;;  %v662_v52 = vpop.f32.mrf.mxu1 }
 0x12e   :  { %v771_v53 = vmul.f32 1.442695, %v755_v10  ;;  %v743_v55 = vadd.f32 %v1441_v54, %v723_v51  ;;  %v698_v56 = vmax.f32 %v1406_v18, %v558_v11  ;;  %v711_v57 = vmax.f32 %v1408_v19, %v662_v52 }
 0x12f   :  { %v560_v58 = vpop.f32.mrf.mxu0  ;;  %v664_v59 = vpop.f32.mrf.mxu1 }
 0x130   :  { %1114 = vpow2.f32 %v771_v53  ;;  %v756_v14 = vsub.f32 0.0, %v743_v55  ;;  %v724_v60 = vmax.f32 %v698_v56, %v711_v57 }
 0x131   :  { %v1109_v15 = vpop.eup %1108  ;;  %v561_v61 = vpop.f32.mrf.mxu0 }
 0x132   :  { %v665_v0 = vpop.f32.mrf.mxu1  ;;  %v791_v1 = vadd.f32 1.0, %v1109_v15  ;;  %v773_v4 = vmul.f32 1.442695, %v756_v14  ;;  %v744_v62 = vadd.f32 %v1441_v54, %v724_v60  ;;  %v699_v63 = vmax.f32 %v1410_v22, %v561_v61 }
 0x133   :  { %v712_v5 = vmax.f32 %v1412_v23, %v665_v0  ;;  %v563_v8 = vpop.f32.mrf.mxu0 }
 0x134   :  { %v667_v18 = vpop.f32.mrf.mxu1  ;;  %1116 = vrcp.f32 %v791_v1  ;;  %v757_v19 = vsub.f32 0.0, %v744_v62 }
 0x135   :  { %v1111_v9 = vpop.eup %1110  ;;  %1118 = vpow2.f32 %v773_v4  ;;  %v725_v12 = vmax.f32 %v699_v63, %v712_v5  ;;  %v566_v13 = vpop.f32.mrf.mxu0 }
 0x136   :  { %v670_v16 = vpop.f32.mrf.mxu1  ;;  %v792_v17 = vadd.f32 1.0, %v1111_v9  ;;  %v775_v20 = vmul.f32 1.442695, %v757_v19  ;;  %v700_v21 = vmax.f32 %v1414_v26, %v566_v13 }
 0x137   :  { %v713_v2 = vmax.f32 %v1416_v27, %v670_v16  ;;  %v745_v24 = vadd.f32 %v1441_v54, %v725_v12  ;;  %v568_v22 = vpop.f32.mrf.mxu0 }
 0x138   :  { %v672_v3 = vpop.f32.mrf.mxu1  ;;  %1120 = vrcp.f32 %v792_v17 }
 0x139   :  { %v726_v23 = vmax.f32 %v700_v21, %v713_v2  ;;  %v1113_v25 = vpop.eup %1112  ;;  %1122 = vpow2.f32 %v775_v20  ;;  %v758_v28 = vsub.f32 0.0, %v745_v24  ;;  %v569_v29 = vpop.f32.mrf.mxu0 }
 0x13a   :  { %v673_v32 = vpop.f32.mrf.mxu1  ;;  %v793_v33 = vadd.f32 1.0, %v1113_v25  ;;  %v701_v6 = vmax.f32 %v1418_v30, %v569_v29 }
 0x13b   :  { %v746_v36 = vadd.f32 %v1441_v54, %v726_v23  ;;  %v714_v26 = vmax.f32 %v1420_v31, %v673_v32  ;;  %v777_v37 = vmul.f32 1.442695, %v758_v28  ;;  %v571_v27 = vpop.f32.mrf.mxu0 }
 0x13c   :  { %v675_v7 = vpop.f32.mrf.mxu1  ;;  %1124 = vrcp.f32 %v793_v33 }
 0x13d   :  { %v759_v40 = vsub.f32 0.0, %v746_v36  ;;  %v727_v41 = vmax.f32 %v701_v6, %v714_v26  ;;  %v1115_v44 = vpop.eup %1114  ;;  %1126 = vpow2.f32 %v777_v37  ;;  %v574_v45 = vpop.f32.mrf.mxu0 }
 0x13e   :  { %v678_v48 = vpop.f32.mrf.mxu1  ;;  %v794_v49 = vadd.f32 1.0, %v1115_v44  ;;  %v702_v51 = vmax.f32 %v1422_v34, %v574_v45 }
 0x13f   :  { %v779_v50 = vmul.f32 1.442695, %v759_v40  ;;  %v747_v10 = vadd.f32 %v1441_v54, %v727_v41  ;;  %v715_v30 = vmax.f32 %v1424_v35, %v678_v48  ;;  %v576_v11 = vpop.f32.mrf.mxu0 }
 0x140   :  { %v680_v31 = vpop.f32.mrf.mxu1  ;;  %1128 = vrcp.f32 %v794_v49 }
 0x141   :  { %v760_v52 = vsub.f32 0.0, %v747_v10  ;;  %v1117_v53 = vpop.eup %1116  ;;  %1130 = vpow2.f32 %v779_v50  ;;  %v728_v55 = vmax.f32 %v702_v51, %v715_v30  ;;  %v577_v56 = vpop.f32.mrf.mxu0 }
 0x142   :  { %v681_v57 = vpop.f32.mrf.mxu1  ;;  %v1119_v58 = vpop.eup %1118  ;;  %v989_v59 = vpack.c.bf16 %v1117_v53, %v1117_v53  ;;  %v703_v60 = vmax.f32 %v1426_v38, %v577_v56 }
 0x143   :  { %v781_v14 = vmul.f32 1.442695, %v760_v52  ;;  %v716_v15 = vmax.f32 %v1428_v39, %v681_v57  ;;  %v795_v34 = vadd.f32 1.0, %v1119_v58  ;;  %v748_v35 = vadd.f32 %v1441_v54, %v728_v55  ;;  %v579_v61 = vpop.f32.mrf.mxu0 }
 0x144   :  { %v683_v0 = vpop.f32.mrf.mxu1  ;;  %871 = vst.msk [vmem:[%s1535_s3] sm:$0xf] %vm870_vm1, %v989_v59 }
 0x145   :  { %1132 = vpow2.f32 %v781_v14  ;;  %v729_v1 = vmax.f32 %v703_v60, %v716_v15  ;;  %v1121_v4 = vpop.eup %1120  ;;  %v761_v62 = vsub.f32 0.0, %v748_v35  ;;  %v582_v63 = vpop.f32.mrf.mxu0 }
 0x146   :  { %1134 = vrcp.f32 %v795_v34  ;;  %v686_v5 = vpop.f32.mrf.mxu1  ;;  %v1123_v38 = vpop.eup %1122  ;;  %v990_v8 = vpack.c.bf16 %v1121_v4, %v1121_v4  ;;  %v704_v18 = vmax.f32 %v1430_v42, %v582_v63 }
 0x147   :  { %v749_v39 = vadd.f32 %v1441_v54, %v729_v1  ;;  %v717_v19 = vmax.f32 %v1432_v43, %v686_v5  ;;  %v796_v9 = vadd.f32 1.0, %v1123_v38  ;;  %v783_v12 = vmul.f32 1.442695, %v761_v62  ;;  %v584_v13 = vpop.f32.mrf.mxu0 }
 0x148   :  { %v688_v16 = vpop.f32.mrf.mxu1  ;;  %872 = vst.msk [vmem:[%s1535_s3 + $0x4] sm:$0xf] %vm870_vm1, %v990_v8 }
 0x149   :  { %v762_v17 = vsub.f32 0.0, %v749_v39  ;;  %v730_v20 = vmax.f32 %v704_v18, %v717_v19  ;;  %v1125_v21 = vpop.eup %1124  ;;  %1136 = vrcp.f32 %v796_v9  ;;  %v585_v2 = vpop.f32.mrf.mxu0 }
 0x14a   :  { %v689_v24 = vpop.f32.mrf.mxu1  ;;  %v1127_v22 = vpop.eup %1126  ;;  %v991_v3 = vpack.c.bf16 %v1125_v21, %v1125_v21  ;;  %1138 = vpow2.f32 %v783_v12  ;;  %v705_v25 = vmax.f32 %v1434_v46, %v585_v2 }
 0x14b   :  { %v785_v42 = vmul.f32 1.442695, %v762_v17  ;;  %v750_v43 = vadd.f32 %v1441_v54, %v730_v20  ;;  %v797_v23 = vadd.f32 1.0, %v1127_v22  ;;  %v718_v28 = vmax.f32 %v1436_v47, %v689_v24  ;;  %v587_v29 = vpop.f32.mrf.mxu0 }
 0x14c   :  { %v691_v32 = vpop.f32.mrf.mxu1  ;;  %873 = vst.msk [vmem:[%s1535_s3 + $0x8] sm:$0xf] %vm870_vm1, %v991_v3 }
 0x14d   :  { %1140 = vpow2.f32 %v785_v42  ;;  %v763_v33 = vsub.f32 0.0, %v750_v43  ;;  %v1129_v36 = vpop.eup %1128  ;;  %v731_v6 = vmax.f32 %v705_v25, %v718_v28 }
 0x14e   :  { %1142 = vrcp.f32 %v797_v23  ;;  %v1131_v26 = vpop.eup %1130  ;;  %v992_v37 = vpack.c.bf16 %v1129_v36, %v1129_v36 }
 0x14f   :  { %v787_v27 = vmul.f32 1.442695, %v763_v33  ;;  %v798_v7 = vadd.f32 1.0, %v1131_v26  ;;  %v751_v46 = vadd.f32 %v1441_v54, %v731_v6 }
 0x150   :  { %874 = vst.msk [vmem:[%s1535_s3 + $0xc] sm:$0xf] %vm870_vm1, %v992_v37 }
 0x151   :  { %1144 = vpow2.f32 %v787_v27  ;;  %v764_v40 = vsub.f32 0.0, %v751_v46 }
 0x152   :  { %v1133_v47 = vpop.eup %1132  ;;  %1146 = vrcp.f32 %v798_v7 }
 0x153   :  { %v1135_v41 = vpop.eup %1134  ;;  %v799_v44 = vadd.f32 1.0, %v1133_v47  ;;  %v789_v48 = vmul.f32 1.442695, %v764_v40 }
 0x154   :  { %v993_v45 = vpack.c.bf16 %v1135_v41, %v1135_v41 }
 0x155   :  { %1148 = vrcp.f32 %v799_v44 }
 0x156   :  { %875 = vst.msk [vmem:[%s1535_s3 + $0x10] sm:$0xf] %vm870_vm1, %v993_v45  ;;  %1150 = vpow2.f32 %v789_v48  ;;  %v1137_v54 = vpop.eup %1136 }
 0x157   :  { %v1139_v49 = vpop.eup %1138  ;;  %v994_v50 = vpack.c.bf16 %v1137_v54, %v1137_v54 }
 0x158   :  { %v800_v10 = vadd.f32 1.0, %v1139_v49 }
 0x159   :  { %876 = vst.msk [vmem:[%s1535_s3 + $0x14] sm:$0xf] %vm870_vm1, %v994_v50 }
 0x15a   :  { %v1141_v51 = vpop.eup %1140  ;;  %1152 = vrcp.f32 %v800_v10 }
 0x15b   :  { %v1143_v30 = vpop.eup %1142  ;;  %v801_v11 = vadd.f32 1.0, %v1141_v51 }
 0x15c   :  { %v995_v31 = vpack.c.bf16 %v1143_v30, %v1143_v30 }
 0x15d   :  { %1154 = vrcp.f32 %v801_v11 }
 0x15e   :  { %v1145_v52 = vpop.eup %1144  ;;  %877 = vst.msk [vmem:[%s1535_s3 + $0x18] sm:$0xf] %vm870_vm1, %v995_v31 }
 0x15f   :  { %v1147_v53 = vpop.eup %1146  ;;  %v802_v55 = vadd.f32 1.0, %v1145_v52 }
 0x160   :  { %v996_v56 = vpack.c.bf16 %v1147_v53, %v1147_v53 }
 0x161   :  { %1156 = vrcp.f32 %v802_v55 }
 0x162   :  { %v1149_v57 = vpop.eup %1148  ;;  %878 = vst.msk [vmem:[%s1535_s3 + $0x1c] sm:$0xf] %vm870_vm1, %v996_v56 }
 0x163   :  { %v1151_v58 = vpop.eup %1150  ;;  %v997_v59 = vpack.c.bf16 %v1149_v57, %v1149_v57 }
 0x164   :  { %v803_v14 = vadd.f32 1.0, %v1151_v58 }
 0x165   :  { %879 = vst.msk [vmem:[%s1535_s3 + $0x20] sm:$0xf] %vm870_vm1, %v997_v59 }
 0x166   :  { %1158 = vrcp.f32 %v803_v14 }
 0x167   :  { %v1153_v60 = vpop.eup %1152 }
 0x168   :  { %v998_v15 = vpack.c.bf16 %v1153_v60, %v1153_v60 }
 0x16a   :  { %v1155_v34 = vpop.eup %1154  ;;  %880 = vst.msk [vmem:[%s1535_s3 + $0x24] sm:$0xf] %vm870_vm1, %v998_v15 }
 0x16b   :  { %v999_v35 = vpack.c.bf16 %v1155_v34, %v1155_v34 }
 0x16d   :  { %881 = vst.msk [vmem:[%s1535_s3 + $0x28] sm:$0xf] %vm870_vm1, %v999_v35 }
 0x16e   :  { %v1157_v61 = vpop.eup %1156 }
 0x16f   :  { %v1000_v0 = vpack.c.bf16 %v1157_v61, %v1157_v61 }
 0x171   :  { %882 = vst.msk [vmem:[%s1535_s3 + $0x2c] sm:$0xf] %vm870_vm1, %v1000_v0 }
 0x173   :  { %v1159_v1 = vpop.eup %1158 }
 0x174   :  { %v1001_v4 = vpack.c.bf16 %v1159_v1, %v1159_v1 }
 0x176   :  { %883 = vst.msk [vmem:[%s1535_s3 + $0x30] sm:$0xf] %vm870_vm1, %v1001_v4 }

// kernel: net_forward.5
= control target key start
LH: loop header
LB: loop body
LE: loop exit
PB: predicated region body
PF: predicated region fallthrough
CT: control target
= control target key end

     0   :  { %vm1517_vm0 = vmmov 0   ;;  %vm858_vm1 = vcmask 261120   ;;  %s1859_s1 = inlined_call_operand.vmem [shape: bf16[1568,128], index: 1, kind: input, shape index: {}]   ;;  %s1860_s0 = inlined_call_operand.vmem [shape: bf16[8,1568], index: 0, kind: input, shape index: {}]   ;;  %s1861_s2 = inlined_call_operand.vmem [shape: f32[1,128], index: 2, kind: input, shape index: {}]   ;;  %s1862_s3 = inlined_call_operand.vmem [shape: f32[8,128], index: 3, kind: output, shape index: {}]  }
   0x1   :  { %v1405_v0 = vld [vmem:[%s1859_s1 + $0x78] sm:$0xff]   ;;  %v1409_v4 = vld [vmem:[%s1859_s1 + $0x70] sm:$0xff]   ;;  %v1413_v8 = vld [vmem:[%s1859_s1 + $0x68] sm:$0xff]  }
   0x2   :  { %v1406_v1 = vld [vmem:[%s1859_s1 + $0xf8] sm:$0xff]   ;;  %1260 = vmatprep.subr.bf16.mxu0 %v1405_v0  ;;  %v1410_v5 = vld [vmem:[%s1859_s1 + $0xf0] sm:$0xff]   ;;  %v1414_v9 = vld [vmem:[%s1859_s1 + $0xe8] sm:$0xff]  }
   0x3   :  { %v1407_v2 = vld [vmem:[%s1859_s1 + $0x38] sm:$0xff]   ;;  %1282 = vmatprep.subr.bf16.mxu1 %v1406_v1  ;;  %v1411_v6 = vld [vmem:[%s1859_s1 + $0x30] sm:$0xff]   ;;  %v1415_v10 = vld [vmem:[%s1859_s1 + $0x28] sm:$0xff]  }
   0x4   :  { %v1408_v3 = vld [vmem:[%s1859_s1 + $0xb8] sm:$0xff]   ;;  %1261 = vmatpush3.bf16.msra.mxu0 %v1407_v2  ;;  %v1412_v7 = vld [vmem:[%s1859_s1 + $0xb0] sm:$0xff]   ;;  %v1416_v11 = vld [vmem:[%s1859_s1 + $0xa8] sm:$0xff]  }
   0x5   :  { %1283 = vmatpush3.bf16.msra.mxu1 %v1408_v3  ;;  %1262 = vmatprep.subr.bf16.mxu0 %v1409_v4  ;;  %v1417_v12 = vld [vmem:[%s1859_s1 + $0x60] sm:$0xff]   ;;  %v1421_v16 = vld [vmem:[%s1859_s1 + $0x58] sm:$0xff]   ;;  %v1425_v20 = vld [vmem:[%s1859_s1 + $0x50] sm:$0xff]  }
   0x6   :  { %1284 = vmatprep.subr.bf16.mxu1 %v1410_v5  ;;  %v1418_v13 = vld [vmem:[%s1859_s1 + $0xe0] sm:$0xff]   ;;  %v1422_v17 = vld [vmem:[%s1859_s1 + $0xd8] sm:$0xff]   ;;  %v1426_v21 = vld [vmem:[%s1859_s1 + $0xd0] sm:$0xff]  }
   0x7   :  { %v1419_v14 = vld [vmem:[%s1859_s1 + $0x20] sm:$0xff]   ;;  %v1423_v18 = vld [vmem:[%s1859_s1 + $0x18] sm:$0xff]   ;;  %v1427_v22 = vld [vmem:[%s1859_s1 + $0x10] sm:$0xff]  }
   0x8   :  { %1263 = vmatpush3.bf16.msra.mxu0 %v1411_v6  ;;  %v1420_v15 = vld [vmem:[%s1859_s1 + $0xa0] sm:$0xff]   ;;  %v1424_v19 = vld [vmem:[%s1859_s1 + $0x98] sm:$0xff]   ;;  %v1428_v23 = vld [vmem:[%s1859_s1 + $0x90] sm:$0xff]  }
   0x9   :  { %1285 = vmatpush3.bf16.msra.mxu1 %v1412_v7  ;;  %1264 = vmatprep.subr.bf16.mxu0 %v1413_v8  ;;  %v1429_v24 = vld [vmem:[%s1859_s1 + $0x48] sm:$0xff]   ;;  %v1433_v28 = vld [vmem:[%s1859_s1 + $0x40] sm:$0xff]   ;;  %v1441_v38 = vld [vmem:[%s1859_s1 + $0x178] sm:$0xff]  }
   0xa   :  { %1286 = vmatprep.subr.bf16.mxu1 %v1414_v9  ;;  %v1430_v25 = vld [vmem:[%s1859_s1 + $0xc8] sm:$0xff]   ;;  %v1434_v29 = vld [vmem:[%s1859_s1 + $0xc0] sm:$0xff]   ;;  %v1442_v39 = vld [vmem:[%s1859_s1 + $0x1f8] sm:$0xff]  }
   0xb   :  { %v1431_v26 = vld [vmem:[%s1859_s1 + $0x8] sm:$0xff]   ;;  %v1435_v30 = vld [vmem:[%s1859_s1] sm:$0xff]   ;;  %v1443_v40 = vld [vmem:[%s1859_s1 + $0x138] sm:$0xff]  }
   0xc   :  { %1265 = vmatpush3.bf16.msra.mxu0 %v1415_v10  ;;  %v1432_v27 = vld [vmem:[%s1859_s1 + $0x88] sm:$0xff]   ;;  %v1436_v31 = vld [vmem:[%s1859_s1 + $0x80] sm:$0xff]   ;;  %v1444_v41 = vld [vmem:[%s1859_s1 + $0x1b8] sm:$0xff]  }
   0xd   :  { %1287 = vmatpush3.bf16.msra.mxu1 %v1416_v11  ;;  %1266 = vmatprep.subr.bf16.mxu0 %v1417_v12  ;;  %v15_v32 = vld [vmem:[%s1860_s0] sm:$0xff]  ;;  %v16_v33 = vld [vmem:[%s1860_s0 + $0x8] sm:$0xff]  ;;  %v1445_v42 = vld [vmem:[%s1859_s1 + $0x170] sm:$0xff]  }
   0xe   :  { %1288 = vmatprep.subr.bf16.mxu1 %v1418_v13  ;;  %v1148_v34 = vcombine.low %v15_v32, %v15_v32  ;;  %v1149_v35 = vcombine.high %v15_v32, %v15_v32  ;;  %v1150_v36 = vcombine.low %v16_v33, %v16_v33  ;;  %v1151_v37 = vcombine.high %v16_v33, %v16_v33  ;;  %v1446_v43 = vld [vmem:[%s1859_s1 + $0x1f0] sm:$0xff]   ;;  %v1449_v46 = vld [vmem:[%s1859_s1 + $0x168] sm:$0xff]   ;;  %v1453_v50 = vld [vmem:[%s1859_s1 + $0x160] sm:$0xff]  }
   0xf   :  { %v1447_v44 = vld [vmem:[%s1859_s1 + $0x130] sm:$0xff]   ;;  %v1450_v47 = vld [vmem:[%s1859_s1 + $0x1e8] sm:$0xff]   ;;  %v1454_v51 = vld [vmem:[%s1859_s1 + $0x1e0] sm:$0xff]  }
  0x10   :  { %1267 = vmatpush3.bf16.msra.mxu0 %v1419_v14  ;;  %894 = vmatprep.mubr.bf16.mxu0 %v1149_v35  ;;  %v1448_v45 = vld [vmem:[%s1859_s1 + $0x1b0] sm:$0xff]   ;;  %v1451_v48 = vld [vmem:[%s1859_s1 + $0x128] sm:$0xff]   ;;  %v1455_v52 = vld [vmem:[%s1859_s1 + $0x120] sm:$0xff]  }
  0x11   :  { %1289 = vmatpush3.bf16.msra.mxu1 %v1420_v15  ;;  %1268 = vmatprep.subr.bf16.mxu0 %v1421_v16  ;;  %v1452_v49 = vld [vmem:[%s1859_s1 + $0x1a8] sm:$0xff]   ;;  %v1456_v53 = vld [vmem:[%s1859_s1 + $0x1a0] sm:$0xff]   ;;  %v1457_v54 = vld [vmem:[%s1859_s1 + $0x158] sm:$0xff]  }
  0x12   :  { %1290 = vmatprep.subr.bf16.mxu1 %v1422_v17  ;;  %934 = vmatprep.mubr.bf16.mxu1 %v1151_v37  ;;  %v1458_v55 = vld [vmem:[%s1859_s1 + $0x1d8] sm:$0xff]   ;;  %v1461_v58 = vld [vmem:[%s1859_s1 + $0x150] sm:$0xff]   ;;  %v1465_v62 = vld [vmem:[%s1859_s1 + $0x148] sm:$0xff]  }
  0x13   :  { %v1459_v56 = vld [vmem:[%s1859_s1 + $0x118] sm:$0xff]   ;;  %v1462_v59 = vld [vmem:[%s1859_s1 + $0x1d0] sm:$0xff]   ;;  %v1466_v63 = vld [vmem:[%s1859_s1 + $0x1c8] sm:$0xff]  }
  0x14   :  { %1269 = vmatpush3.bf16.msra.mxu0 %v1423_v18  ;;  %v1460_v57 = vld [vmem:[%s1859_s1 + $0x198] sm:$0xff]   ;;  %v1463_v60 = vld [vmem:[%s1859_s1 + $0x110] sm:$0xff]   ;;  %v1467_v0 = vld [vmem:[%s1859_s1 + $0x108] sm:$0xff]  }
  0x15   :  { %1291 = vmatpush3.bf16.msra.mxu1 %v1424_v19  ;;  %1270 = vmatprep.subr.bf16.mxu0 %v1425_v20  ;;  %v1464_v61 = vld [vmem:[%s1859_s1 + $0x190] sm:$0xff]   ;;  %v1468_v1 = vld [vmem:[%s1859_s1 + $0x188] sm:$0xff]   ;;  %v1469_v2 = vld [vmem:[%s1859_s1 + $0x140] sm:$0xff]  }
  0x16   :  { %1292 = vmatprep.subr.bf16.mxu1 %v1426_v21  ;;  %v1470_v3 = vld [vmem:[%s1859_s1 + $0x1c0] sm:$0xff]   ;;  %v17_v6 = vld [vmem:[%s1860_s0 + $0x10] sm:$0xff]  ;;  %v18_v9 = vld [vmem:[%s1860_s0 + $0x18] sm:$0xff] }
  0x17   :  { %v1471_v4 = vld [vmem:[%s1859_s1 + $0x100] sm:$0xff]   ;;  %v1152_v7 = vcombine.low %v17_v6, %v17_v6  ;;  %v1153_v8 = vcombine.high %v17_v6, %v17_v6  ;;  %v1154_v10 = vcombine.low %v18_v9, %v18_v9  ;;  %v1155_v11 = vcombine.high %v18_v9, %v18_v9  ;;  %v1477_v12 = vld [vmem:[%s1859_s1 + $0x278] sm:$0xff]   ;;  %v1481_v16 = vld [vmem:[%s1859_s1 + $0x270] sm:$0xff]  }
  0x18   :  { %1271 = vmatpush3.bf16.msra.mxu0 %v1427_v22  ;;  %v1472_v5 = vld [vmem:[%s1859_s1 + $0x180] sm:$0xff]   ;;  %v1478_v13 = vld [vmem:[%s1859_s1 + $0x2f8] sm:$0xff]   ;;  %v1482_v17 = vld [vmem:[%s1859_s1 + $0x2f0] sm:$0xff]  }
  0x19   :  { %1293 = vmatpush3.bf16.msra.mxu1 %v1428_v23  ;;  %1272 = vmatprep.subr.bf16.mxu0 %v1429_v24  ;;  %v1479_v14 = vld [vmem:[%s1859_s1 + $0x238] sm:$0xff]   ;;  %v1483_v18 = vld [vmem:[%s1859_s1 + $0x230] sm:$0xff]   ;;  %v1485_v20 = vld [vmem:[%s1859_s1 + $0x268] sm:$0xff]  }
  0x1a   :  { %1294 = vmatprep.subr.bf16.mxu1 %v1430_v25  ;;  %v1480_v15 = vld [vmem:[%s1859_s1 + $0x2b8] sm:$0xff]   ;;  %v1484_v19 = vld [vmem:[%s1859_s1 + $0x2b0] sm:$0xff]   ;;  %v1486_v21 = vld [vmem:[%s1859_s1 + $0x2e8] sm:$0xff]  }
  0x1b   :  { %v1487_v22 = vld [vmem:[%s1859_s1 + $0x228] sm:$0xff]   ;;  %v1489_v24 = vld [vmem:[%s1859_s1 + $0x260] sm:$0xff]   ;;  %v1497_v32 = vld [vmem:[%s1859_s1 + $0x250] sm:$0xff]  }
  0x1c   :  { %1273 = vmatpush3.bf16.msra.mxu0 %v1431_v26  ;;  %v1488_v23 = vld [vmem:[%s1859_s1 + $0x2a8] sm:$0xff]   ;;  %v1490_v25 = vld [vmem:[%s1859_s1 + $0x2e0] sm:$0xff]   ;;  %v1498_v33 = vld [vmem:[%s1859_s1 + $0x2d0] sm:$0xff]  }
  0x1d   :  { %1295 = vmatpush3.bf16.msra.mxu1 %v1432_v27  ;;  %1274 = vmatprep.subr.bf16.mxu0 %v1433_v28  ;;  %v1491_v26 = vld [vmem:[%s1859_s1 + $0x220] sm:$0xff]   ;;  %v1493_v28 = vld [vmem:[%s1859_s1 + $0x258] sm:$0xff]   ;;  %v1500_v35 = vld [vmem:[%s1859_s1 + $0x290] sm:$0xff]  }
  0x1e   :  { %1296 = vmatprep.subr.bf16.mxu1 %v1434_v29  ;;  %v1492_v27 = vld [vmem:[%s1859_s1 + $0x2a0] sm:$0xff]   ;;  %v1494_v29 = vld [vmem:[%s1859_s1 + $0x2d8] sm:$0xff]   ;;  %v1502_v37 = vld [vmem:[%s1859_s1 + $0x2c8] sm:$0xff]  }
  0x20   :  { %1275 = vmatpush3.bf16.msra.mxu0 %v1435_v30  ;;  %v1495_v30 = vld [vmem:[%s1859_s1 + $0x218] sm:$0xff]  }
  0x21   :  { %1297 = vmatpush3.bf16.msra.mxu1 %v1436_v31  ;;  %1304 = vmatprep.subr.bf16.mxu0 %v1441_v38  ;;  %v1496_v31 = vld [vmem:[%s1859_s1 + $0x298] sm:$0xff]   ;;  %v1503_v38 = vld [vmem:[%s1859_s1 + $0x208] sm:$0xff]  }
  0x22   :  { %1326 = vmatprep.subr.bf16.mxu1 %v1442_v39  ;;  %v1504_v39 = vld [vmem:[%s1859_s1 + $0x288] sm:$0xff]  }
  0x23   :  { %895 = vmatmul.mubr.bf16.vlgmr.msra.gmra.mxu0 %v1148_v34  ;;  %v1499_v34 = vld [vmem:[%s1859_s1 + $0x210] sm:$0xff]  }
  0x24   :  { %935 = vmatmul.mubr.bf16.vlgmr.msra.gmra.mxu1 %v1150_v36  ;;  %1305 = vmatpush3.bf16.msra.mxu0 %v1443_v40  ;;  %v1501_v36 = vld [vmem:[%s1859_s1 + $0x248] sm:$0xff]   ;;  %v1505_v40 = vld [vmem:[%s1859_s1 + $0x240] sm:$0xff]  }
  0x25   :  { %1327 = vmatpush3.bf16.msra.mxu1 %v1444_v41  ;;  %1306 = vmatprep.subr.bf16.mxu0 %v1445_v42  ;;  %v1506_v41 = vld [vmem:[%s1859_s1 + $0x2c0] sm:$0xff]  }
  0x26   :  { %1328 = vmatprep.subr.bf16.mxu1 %v1446_v43  ;;  %974 = vmatprep.mubr.bf16.mxu0 %v1153_v8  ;;  %v1507_v42 = vld [vmem:[%s1859_s1 + $0x200] sm:$0xff]  }
  0x27   :  { %1014 = vmatprep.mubr.bf16.mxu1 %v1155_v11  ;;  %v1508_v43 = vld [vmem:[%s1859_s1 + $0x280] sm:$0xff]  }
  0x28   :  { %1307 = vmatpush3.bf16.msra.mxu0 %v1447_v44  ;;  %v19_v44 = vld [vmem:[%s1860_s0 + $0x20] sm:$0xff] }
  0x29   :  { %1329 = vmatpush3.bf16.msra.mxu1 %v1448_v45  ;;  %1308 = vmatprep.subr.bf16.mxu0 %v1449_v46  ;;  %v20_v45 = vld [vmem:[%s1860_s0 + $0x28] sm:$0xff]  ;;  %v1156_v46 = vcombine.low %v19_v44, %v19_v44 }
  0x2a   :  { %1330 = vmatprep.subr.bf16.mxu1 %v1450_v47  ;;  %v1157_v47 = vcombine.high %v19_v44, %v19_v44 }
  0x2c   :  { %1309 = vmatpush3.bf16.msra.mxu0 %v1451_v48  ;;  %v1158_v48 = vcombine.low %v20_v45, %v20_v45 }
  0x2d   :  { %1331 = vmatpush3.bf16.msra.mxu1 %v1452_v49  ;;  %1310 = vmatprep.subr.bf16.mxu0 %v1453_v50  ;;  %v1159_v49 = vcombine.high %v20_v45, %v20_v45  ;;  %v1513_v50 = vld [vmem:[%s1859_s1 + $0x308] sm:$0xff]  }
  0x2e   :  { %1332 = vmatprep.subr.bf16.mxu1 %v1454_v51  ;;  %v1516_v51 = vmov 0.0  }
  0x30   :  { %1311 = vmatpush3.bf16.msra.mxu0 %v1455_v52  ;;  %v1514_v52 = vld [vmem:[%s1859_s1 + $0x300] sm:$0xff]  }
  0x31   :  { %1333 = vmatpush3.bf16.msra.mxu1 %v1456_v53  ;;  %1312 = vmatprep.subr.bf16.mxu0 %v1457_v54  ;;  %v1515_v53 = vld [vmem:[%s1860_s0 + $0x30] ss:$0 sps:$4 sm:$0xff]  }
  0x32   :  { %1334 = vmatprep.subr.bf16.mxu1 %v1458_v55 }
  0x34   :  { %1313 = vmatpush3.bf16.msra.mxu0 %v1459_v56 }
  0x35   :  { %1335 = vmatpush3.bf16.msra.mxu1 %v1460_v57  ;;  %1314 = vmatprep.subr.bf16.mxu0 %v1461_v58 }
  0x36   :  { %1336 = vmatprep.subr.bf16.mxu1 %v1462_v59 }
  0x38   :  { %1315 = vmatpush3.bf16.msra.mxu0 %v1463_v60 }
  0x39   :  { %1337 = vmatpush3.bf16.msra.mxu1 %v1464_v61  ;;  %1316 = vmatprep.subr.bf16.mxu0 %v1465_v62 }
  0x3a   :  { %1338 = vmatprep.subr.bf16.mxu1 %v1466_v63 }
  0x3c   :  { %1317 = vmatpush3.bf16.msra.mxu0 %v1467_v0 }
  0x3d   :  { %1339 = vmatpush3.bf16.msra.mxu1 %v1468_v1  ;;  %1318 = vmatprep.subr.bf16.mxu0 %v1469_v2 }
  0x3e   :  { %1340 = vmatprep.subr.bf16.mxu1 %v1470_v3 }
  0x40   :  { %1319 = vmatpush3.bf16.msra.mxu0 %v1471_v4 }
  0x41   :  { %1341 = vmatpush3.bf16.msra.mxu1 %v1472_v5  ;;  %1348 = vmatprep.subr.bf16.mxu0 %v1477_v12 }
  0x42   :  { %1370 = vmatprep.subr.bf16.mxu1 %v1478_v13 }
  0x43   :  { %975 = vmatmul.mubr.bf16.vlgmr.msra.gmra.mxu0 %v1152_v7  ;;  %v1147_v7 = vld [vmem:[%s1861_s2] ss:$0 sm:$0xff] }
  0x44   :  { %1015 = vmatmul.mubr.bf16.vlgmr.msra.gmra.mxu1 %v1154_v10  ;;  %1349 = vmatpush3.bf16.msra.mxu0 %v1479_v14 }
  0x45   :  { %1371 = vmatpush3.bf16.msra.mxu1 %v1480_v15  ;;  %1350 = vmatprep.subr.bf16.mxu0 %v1481_v16 }
  0x46   :  { %1372 = vmatprep.subr.bf16.mxu1 %v1482_v17  ;;  %1054 = vmatprep.mubr.bf16.mxu0 %v1157_v47 }
  0x47   :  { %1094 = vmatprep.mubr.bf16.mxu1 %v1159_v49 }
  0x48   :  { %1351 = vmatpush3.bf16.msra.mxu0 %v1483_v18 }
  0x49   :  { %1373 = vmatpush3.bf16.msra.mxu1 %v1484_v19  ;;  %1352 = vmatprep.subr.bf16.mxu0 %v1485_v20 }
  0x4a   :  { %1374 = vmatprep.subr.bf16.mxu1 %v1486_v21 }
  0x4c   :  { %1353 = vmatpush3.bf16.msra.mxu0 %v1487_v22 }
  0x4d   :  { %1375 = vmatpush3.bf16.msra.mxu1 %v1488_v23  ;;  %1354 = vmatprep.subr.bf16.mxu0 %v1489_v24 }
  0x4e   :  { %1376 = vmatprep.subr.bf16.mxu1 %v1490_v25 }
  0x50   :  { %1355 = vmatpush3.bf16.msra.mxu0 %v1491_v26 }
  0x51   :  { %1377 = vmatpush3.bf16.msra.mxu1 %v1492_v27  ;;  %1356 = vmatprep.subr.bf16.mxu0 %v1493_v28 }
  0x52   :  { %1378 = vmatprep.subr.bf16.mxu1 %v1494_v29 }
  0x54   :  { %1357 = vmatpush3.bf16.msra.mxu0 %v1495_v30 }
  0x55   :  { %1379 = vmatpush3.bf16.msra.mxu1 %v1496_v31  ;;  %1358 = vmatprep.subr.bf16.mxu0 %v1497_v32 }
  0x56   :  { %1380 = vmatprep.subr.bf16.mxu1 %v1498_v33 }
  0x58   :  { %1359 = vmatpush3.bf16.msra.mxu0 %v1499_v34 }
  0x59   :  { %1381 = vmatpush3.bf16.msra.mxu1 %v1500_v35  ;;  %1360 = vmatprep.subr.bf16.mxu0 %v1501_v36 }
  0x5a   :  { %1382 = vmatprep.subr.bf16.mxu1 %v1502_v37 }
  0x5c   :  { %1361 = vmatpush3.bf16.msra.mxu0 %v1503_v38 }
  0x5d   :  { %1383 = vmatpush3.bf16.msra.mxu1 %v1504_v39  ;;  %1362 = vmatprep.subr.bf16.mxu0 %v1505_v40 }
  0x5e   :  { %1384 = vmatprep.subr.bf16.mxu1 %v1506_v41 }
  0x60   :  { %1363 = vmatpush3.bf16.msra.mxu0 %v1507_v42 }
  0x61   :  { %1385 = vmatpush3.bf16.msra.mxu1 %v1508_v43  ;;  %1395 = vmatprep.subr.bf16.mxu0 %v1516_v51 }
  0x63   :  { %1055 = vmatmul.mubr.bf16.vlgmr.msra.gmra.mxu0 %v1156_v46 }
  0x64   :  { %1095 = vmatmul.mubr.bf16.vlgmr.msra.gmra.mxu1 %v1158_v48  ;;  %1396 = vmatpush3.bf16.msra.mxu0 %v1513_v50 }
  0x65   :  { %1397 = vmatprep.subr.bf16.mxu0 %v1516_v51  ;;  %1399 = vmatprep.mubr.msk.bf16.mxu0 %vm1517_vm0, %v1516_v51 }
  0x68   :  { %1398 = vmatpush3.bf16.msra.mxu0 %v1514_v52 }
  0x6b   :  { %1400 = vmatmul.mubr.msk.bf16.vlgmr.msra.gmra.mxu0 %vm858_vm1, %v1515_v53 }
  0xe3   :  { %v1276_v54 = vpop.f32.mrf.mxu0 }
  0xe4   :  { %v1298_v55 = vpop.f32.mrf.mxu1 }
  0xe5   :  { %v1277_v56 = vpop.f32.mrf.mxu0 }
  0xe6   :  { %v1299_v57 = vpop.f32.mrf.mxu1  ;;  %v1278_v6 = vadd.f32 %v1277_v56, %v1276_v54 }
  0xe7   :  { %v1279_v58 = vpop.f32.mrf.mxu0  ;;  %v1300_v9 = vadd.f32 %v1299_v57, %v1298_v55 }
  0xe8   :  { %v1301_v59 = vpop.f32.mrf.mxu1  ;;  %v897_v8 = vadd.f32 %v1278_v6, %v1147_v7 }
  0xe9   :  { %v1280_v60 = vpop.f32.mrf.mxu0 }
  0xea   :  { %v1302_v61 = vpop.f32.mrf.mxu1  ;;  %v937_v11 = vadd.f32 %v1300_v9, %v897_v8 }
 0x103   :  { %v1320_v62 = vpop.f32.mrf.mxu0 }
 0x104   :  { %v1342_v63 = vpop.f32.mrf.mxu1 }
 0x105   :  { %v1321_v0 = vpop.f32.mrf.mxu0 }
 0x106   :  { %v1343_v1 = vpop.f32.mrf.mxu1  ;;  %v1322_v10 = vadd.f32 %v1321_v0, %v1320_v62 }
 0x107   :  { %v1323_v2 = vpop.f32.mrf.mxu0  ;;  %v1344_v13 = vadd.f32 %v1343_v1, %v1342_v63 }
 0x108   :  { %v1345_v3 = vpop.f32.mrf.mxu1  ;;  %v977_v12 = vadd.f32 %v1322_v10, %v937_v11 }
 0x109   :  { %v1324_v4 = vpop.f32.mrf.mxu0 }
 0x10a   :  { %v1346_v5 = vpop.f32.mrf.mxu1  ;;  %v1017_v17 = vadd.f32 %v1344_v13, %v977_v12 }
 0x123   :  { %v1364_v14 = vpop.f32.mrf.mxu0 }
 0x124   :  { %v1386_v15 = vpop.f32.mrf.mxu1 }
 0x125   :  { %v1365_v16 = vpop.f32.mrf.mxu0 }
 0x126   :  { %v1366_v18 = vadd.f32 %v1365_v16, %v1364_v14  ;;  %v1387_v19 = vpop.f32.mrf.mxu1 }
 0x127   :  { %v1388_v20 = vadd.f32 %v1387_v19, %v1386_v15  ;;  %v1367_v21 = vpop.f32.mrf.mxu0 }
 0x128   :  { %v1057_v22 = vadd.f32 %v1366_v18, %v1017_v17  ;;  %v1389_v23 = vpop.f32.mrf.mxu1 }
 0x129   :  { %v1368_v24 = vpop.f32.mrf.mxu0 }
 0x12a   :  { %v1390_v25 = vpop.f32.mrf.mxu1  ;;  %v1097_v26 = vadd.f32 %v1388_v20, %v1057_v22 }
 0x12b   :  { %v1136_v27 = vpop.f32.mrf.mxu0 }
 0x12c   :  { %v1137_v28 = vadd.f32 %v1136_v27, %v1097_v26 }
 0x12d   :  { %v1401_v29 = vpop.f32.mrf.mxu0 }
 0x12e   :  { %1142 = vst [vmem:[%s1862_s3] sm:$0xff] %v1137_v28 }
 0x12f   :  { %v1139_v30 = vpop.f32.mrf.mxu0 }
 0x131   :  { %v1402_v31 = vpop.f32.mrf.mxu0 }

</bundles_post_ra>
